<compile_context>
chip_gen: v7x
topology: tpu7x:2x2x1
jax: 0.10.0
libtpu: 0.0.40
codegen_flags: <defaults>
</compile_context>

<pallas_src>
import functools

import jax
import jax.numpy as jnp
from jax import lax
from jax.experimental import pallas as pl
from jax.experimental.pallas import tpu as pltpu

_BF16 = jnp.bfloat16
_CLS_PAD = 128  # lane-dense classifier output width


# ----------------- single-buffered weight BlockSpecs (probed) -----------------

def _probe_weight_pipeline_mode():
    """Weights use a constant index_map across the grid, so they can be
    single-buffered (pl.Buffered(1)) instead of default double-buffering.
    Probe once; fall back cleanly if this JAX build rejects it."""
    try:
        mode = pl.Buffered(1)
        wspec = pl.BlockSpec((8, 128), lambda i: (0, 0), pipeline_mode=mode)

        def k(x_ref, w_ref, o_ref):
            o_ref[...] = x_ref[...] + w_ref[...]

        out = pl.pallas_call(
            k,
            out_shape=jax.ShapeDtypeStruct((16, 128), jnp.float32),
            grid=(2,),
            in_specs=[pl.BlockSpec((8, 128), lambda i: (i, 0)), wspec],
            out_specs=pl.BlockSpec((8, 128), lambda i: (i, 0)),
        )(jnp.zeros((16, 128), jnp.float32), jnp.ones((8, 128), jnp.float32))
        jax.block_until_ready(out)
        return mode
    except Exception:
        return None


_WEIGHT_PIPELINE_MODE = _probe_weight_pipeline_mode()


def _rep(shape):
    """BlockSpec for an operand replicated across the whole grid (weights/biases)."""
    zeros = (0,) * len(shape)
    if _WEIGHT_PIPELINE_MODE is not None:
        return pl.BlockSpec(shape, lambda *_: zeros,
                            pipeline_mode=_WEIGHT_PIPELINE_MODE)
    return pl.BlockSpec(shape, lambda *_: zeros)


def _row_tile(rows, target=256):
    """Largest row tile <= target that divides `rows` and is a multiple of 8
    (or the full extent).  Prefers >= 2 grid steps so v7x's two TensorCores
    both get work."""
    best = rows
    for tm in (target, 128, 64, 32, 16, 8):
        if tm <= rows and rows % tm == 0:
            best = tm
            break
    if best == rows and rows >= 16 and (rows // 2) % 8 == 0:
        best = rows // 2
    return best


# ------------------------------- Pallas kernels -------------------------------

def _gelu(x):
    # TODO(synk): HF BERT default is exact erf-GELU; tanh approximation drifts slightly.
    return 0.5 * x * (1.0 + jnp.tanh(0.7978845608028654 * (x + 0.044715 * x * x * x)))


def _layernorm_rows(y, g, b, eps):
    mean = jnp.mean(y, axis=-1, keepdims=True)
    var = jnp.mean((y - mean) ** 2, axis=-1, keepdims=True)
    return (y - mean) * lax.rsqrt(var + eps) * g + b


def _layernorm_kernel(x_ref, g_ref, b_ref, o_ref, *, eps):
    # x: [tm, H] (bf16); g, b: [1, H] (f32); math in f32.
    y = _layernorm_rows(x_ref[...].astype(jnp.float32), g_ref[...], b_ref[...], eps)
    o_ref[...] = y.astype(o_ref.dtype)


def _attn_block_kernel(x_ref, mask_ref, wqkv_ref, bqkv_ref, wo_ref, bo_ref,
                       g_ref, beta_ref, o_ref, *, num_heads, head_dim, scale, eps):
    # x: [S, H] bf16, mask: [1, S] f32 additive,
    # wqkv: [nH, H, 3D] bf16 (per-head Q|K|V cols), bqkv: [nH, 1, 3D] f32,
    # wo:   [nH, D, H] bf16 (per-head row block of the output projection), bo: [1, H] f32.
    x = x_ref[...]
    m = mask_ref[...]                                    # [1, S], broadcasts over rows
    S, H = x.shape
    D = head_dim

    def head_body(h, acc):
        # Per-head QKV projection: 2-D matmul, f32 accumulate, bias in f32.
        qkv_h = (jnp.dot(x, wqkv_ref[h], preferred_element_type=jnp.float32)
                 + bqkv_ref[h])                          # [S, 3D]
        q = (qkv_h[:, 0 * D:1 * D] * scale).astype(x.dtype)   # scale folded into q
        k = qkv_h[:, 1 * D:2 * D].astype(x.dtype)
        v = qkv_h[:, 2 * D:3 * D].astype(x.dtype)
        # Scores without an explicit transpose: contract the last dims of q and k.
        s = lax.dot_general(q, k, (((1,), (1,)), ((), ())),
                            preferred_element_type=jnp.float32) + m           # [S, S]
        s = s - jnp.max(s, axis=-1, keepdims=True)
        p = jnp.exp(s)
        p = p * pl.reciprocal(jnp.sum(p, axis=-1, keepdims=True), approx=True)
        ctx = jnp.dot(p.astype(x.dtype), v, preferred_element_type=jnp.float32)  # [S, D]
        # Distribute the output projection over heads and accumulate into a single
        # lane-dense [S, H] f32 accumulator: sum_h ctx_h @ Wo[h*D:(h+1)*D, :].
        # No lane-axis concat, no sub-128-lane context stores.
        return acc + jnp.dot(ctx.astype(x.dtype), wo_ref[h],
                             preferred_element_type=jnp.float32)

    # TODO(synk): at production sizes add a flash-style online-softmax KV loop and
    # process 2 heads (128 lanes) per iteration at head_dim=64.
    attn = lax.fori_loop(0, num_heads, head_body,
                         jnp.zeros((S, H), jnp.float32), unroll=True)
    y = attn + bo_ref[...] + x.astype(jnp.float32)       # output bias + residual
    o_ref[...] = _layernorm_rows(y, g_ref[...], beta_ref[...], eps).astype(o_ref.dtype)


def _ffn_block_kernel(x_ref, w1_ref, b1_ref, w2_ref, b2_ref, g_ref, beta_ref, o_ref,
                      *, eps):
    # x: [tm, H] bf16, w1: [H, I] bf16, w2: [I, H] bf16, biases/LN params f32.
    # TODO(synk): at production I=3072 tile the intermediate dim with an f32
    # [tm, H] accumulator scratch instead of materializing the full [tm, I] tile.
    x = x_ref[...]
    t = jnp.dot(x, w1_ref[...], preferred_element_type=jnp.float32) + b1_ref[...]
    t = _gelu(t)
    y = (jnp.dot(t.astype(w2_ref.dtype), w2_ref[...],
                 preferred_element_type=jnp.float32) + b2_ref[...])
    y = y + x.astype(jnp.float32)                        # residual
    o_ref[...] = _layernorm_rows(y, g_ref[...], beta_ref[...], eps).astype(o_ref.dtype)


def _pooler_cls_kernel(x_ref, wp_ref, bp_ref, wc_ref, bc_ref, o_ref):
    # x: [B, H] bf16 (CLS tokens) -> tanh(x@Wp+bp) -> dropout(identity) -> @Wc_pad+bc_pad.
    pooled = jnp.tanh(jnp.dot(x_ref[...], wp_ref[...],
                              preferred_element_type=jnp.float32) + bp_ref[...])
    # TODO(synk): Dropout(0.5) is identity (inference semantics); training-mode dropout
    # would use pltpu.prng_seed / pltpu.prng_random_bits.
    logits = (jnp.dot(pooled.astype(wc_ref.dtype), wc_ref[...],
                      preferred_element_type=jnp.float32) + bc_ref[...])
    o_ref[...] = logits.astype(o_ref.dtype)


# ------------------------------- Kernel wrappers -------------------------------

def layernorm_rows(x2d, gamma_1h, beta_1h, eps=1e-12):
    R, H = x2d.shape
    tm = _row_tile(R)
    return pl.pallas_call(
        functools.partial(_layernorm_kernel, eps=eps),
        out_shape=jax.ShapeDtypeStruct((R, H), x2d.dtype),
        grid=(R // tm,),
        in_specs=[pl.BlockSpec((tm, H), lambda i: (i, 0)),
                  _rep((1, H)), _rep((1, H))],
        out_specs=pl.BlockSpec((tm, H), lambda i: (i, 0)),
        compiler_params=pltpu.CompilerParams(dimension_semantics=("parallel",)),
    )(x2d, gamma_1h, beta_1h)


def attention_block(x, add_mask, lp, *, num_heads, head_dim, eps=1e-12):
    B, S, H = x.shape
    D = head_dim
    return pl.pallas_call(
        functools.partial(_attn_block_kernel, num_heads=num_heads, head_dim=head_dim,
                          scale=1.0 / (head_dim ** 0.5), eps=eps),
        out_shape=jax.ShapeDtypeStruct((B, S, H), x.dtype),
        grid=(B,),
        in_specs=[pl.BlockSpec((None, S, H), lambda b: (b, 0, 0)),
                  pl.BlockSpec((None, 1, S), lambda b: (b, 0, 0)),
                  _rep((num_heads, H, 3 * D)), _rep((num_heads, 1, 3 * D)),
                  _rep((num_heads, D, H)), _rep((1, H)),
                  _rep((1, H)), _rep((1, H))],
        out_specs=pl.BlockSpec((None, S, H), lambda b: (b, 0, 0)),
        # TODO(synk): at production sizes raise vmem_limit_bytes (v5e/v6e) here.
        compiler_params=pltpu.CompilerParams(dimension_semantics=("parallel",)),
    )(x, add_mask, lp["wqkv_heads"], lp["bqkv_heads"], lp["wo_heads"], lp["o_b"],
      lp["attn_ln_g"], lp["attn_ln_b"])


def ffn_block(x2d, lp, eps=1e-12):
    R, H = x2d.shape
    I = lp["ffn_w1"].shape[1]
    tm = _row_tile(R)
    return pl.pallas_call(
        functools.partial(_ffn_block_kernel, eps=eps),
        out_shape=jax.ShapeDtypeStruct((R, H), x2d.dtype),
        grid=(R // tm,),
        in_specs=[pl.BlockSpec((tm, H), lambda i: (i, 0)),
                  _rep((H, I)), _rep((1, I)),
                  _rep((I, H)), _rep((1, H)),
                  _rep((1, H)), _rep((1, H))],
        out_specs=pl.BlockSpec((tm, H), lambda i: (i, 0)),
        compiler_params=pltpu.CompilerParams(dimension_semantics=("parallel",)),
    )(x2d, lp["ffn_w1"], lp["ffn_b1"], lp["ffn_w2"], lp["ffn_b2"],
      lp["ffn_ln_g"], lp["ffn_ln_b"])


def pooler_classifier(cls_tok, prepared, num_labels):
    B, H = cls_tok.shape
    vmem = pl.BlockSpec(memory_space=pltpu.MemorySpace.VMEM)
    out = pl.pallas_call(
        _pooler_cls_kernel,
        out_shape=jax.ShapeDtypeStruct((B, _CLS_PAD), jnp.float32),
        in_specs=[vmem, vmem, vmem, vmem, vmem],
        out_specs=vmem,
    )(cls_tok, prepared["pooler_w"], prepared["pooler_b"],
      prepared["cls_w_pad"], prepared["cls_b_pad"])
    return out[:, :num_labels]


# ------------------------------- Model (glue) ---------------------------------

class Config:
    vocab_size = 100
    max_position = 16
    type_vocab = 2
    hidden = 32
    num_heads = 2
    head_dim = 16
    intermediate = 64
    num_layers = 2
    num_labels = 2


def init_params(cfg, key):
    """PyTorch-layout parameters (f32, fused [H, 3H] QKV in Q|K|V order)."""
    def nrm(key, shape):
        return 0.02 * jax.random.normal(key, shape, dtype=jnp.float32)

    keys = jax.random.split(key, 64)
    ki = iter(keys)
    p = {
        "word_emb": nrm(next(ki), (cfg.vocab_size, cfg.hidden)),
        "pos_emb": nrm(next(ki), (cfg.max_position, cfg.hidden)),
        "type_emb": nrm(next(ki), (cfg.type_vocab, cfg.hidden)),
        "emb_ln_g": jnp.ones((cfg.hidden,), jnp.float32),
        "emb_ln_b": jnp.zeros((cfg.hidden,), jnp.float32),
        "layers": [],
        "pooler_w": nrm(next(ki), (cfg.hidden, cfg.hidden)),
        "pooler_b": jnp.zeros((cfg.hidden,), jnp.float32),
        "cls_w": nrm(next(ki), (cfg.hidden, cfg.num_labels)),
        "cls_b": jnp.zeros((cfg.num_labels,), jnp.float32),
    }
    for _ in range(cfg.num_layers):
        p["layers"].append({
            "qkv_w": nrm(next(ki), (cfg.hidden, 3 * cfg.hidden)),
            "qkv_b": jnp.zeros((3 * cfg.hidden,), jnp.float32),
            "o_w": nrm(next(ki), (cfg.hidden, cfg.hidden)),
            "o_b": jnp.zeros((cfg.hidden,), jnp.float32),
            "attn_ln_g": jnp.ones((cfg.hidden,), jnp.float32),
            "attn_ln_b": jnp.zeros((cfg.hidden,), jnp.float32),
            "ffn_w1": nrm(next(ki), (cfg.hidden, cfg.intermediate)),
            "ffn_b1": jnp.zeros((cfg.intermediate,), jnp.float32),
            "ffn_w2": nrm(next(ki), (cfg.intermediate, cfg.hidden)),
            "ffn_b2": jnp.zeros((cfg.hidden,), jnp.float32),
            "ffn_ln_g": jnp.ones((cfg.hidden,), jnp.float32),
            "ffn_ln_b": jnp.zeros((cfg.hidden,), jnp.float32),
        })
    return p


def prepare_params(p, cfg):
    """One-time kernel-layout prep: bf16 matmul weights, head-major QKV / Wo,
    128-lane-padded classifier, (1, N)-shaped biases/LN params kept in f32."""
    H, nH, D, I = cfg.hidden, cfg.num_heads, cfg.head_dim, cfg.intermediate

    def qkv_to_heads(w, b):
        wq, wk, wv = w[:, :H], w[:, H:2 * H], w[:, 2 * H:]
        def wheads(m):                       # [H, H] -> [nH, H, D]
            return m.reshape(H, nH, D).transpose(1, 0, 2)
        def bheads(v):                       # [H] -> [nH, 1, D]
            return v.reshape(nH, 1, D)
        wqkv = jnp.concatenate([wheads(wq), wheads(wk), wheads(wv)], axis=-1)   # [nH, H, 3D]
        bqkv = jnp.concatenate([bheads(b[:H]), bheads(b[H:2 * H]), bheads(b[2 * H:])],
                               axis=-1)                                          # [nH, 1, 3D]
        return wqkv.astype(_BF16), bqkv

    prep = {
        "word_emb": p["word_emb"], "pos_emb": p["pos_emb"], "type_emb": p["type_emb"],
        "emb_ln_g": p["emb_ln_g"].reshape(1, H), "emb_ln_b": p["emb_ln_b"].reshape(1, H),
        "pooler_w": p["pooler_w"].astype(_BF16),
        "pooler_b": p["pooler_b"].reshape(1, H),
        # classifier padding hoisted out of the forward pass (done once here)
        "cls_w_pad": jnp.zeros((H, _CLS_PAD), _BF16).at[:, :cfg.num_labels].set(
            p["cls_w"].astype(_BF16)),
        "cls_b_pad": jnp.zeros((1, _CLS_PAD), jnp.float32).at[0, :cfg.num_labels].set(
            p["cls_b"]),
        "layers": [],
    }
    for lp in p["layers"]:
        wqkv_heads, bqkv_heads = qkv_to_heads(lp["qkv_w"], lp["qkv_b"])
        prep["layers"].append({
            "wqkv_heads": wqkv_heads,                                   # [nH, H, 3D] bf16
            "bqkv_heads": bqkv_heads,                                   # [nH, 1, 3D] f32
            "wo_heads": lp["o_w"].reshape(nH, D, H).astype(_BF16),      # [nH, D, H] bf16
            "o_b": lp["o_b"].reshape(1, H),
            "attn_ln_g": lp["attn_ln_g"].reshape(1, H),
            "attn_ln_b": lp["attn_ln_b"].reshape(1, H),
            "ffn_w1": lp["ffn_w1"].astype(_BF16),
            "ffn_b1": lp["ffn_b1"].reshape(1, I),
            "ffn_w2": lp["ffn_w2"].astype(_BF16),
            "ffn_b2": lp["ffn_b2"].reshape(1, H),
            "ffn_ln_g": lp["ffn_ln_g"].reshape(1, H),
            "ffn_ln_b": lp["ffn_ln_b"].reshape(1, H),
        })
    return prep


def bert_classifier_forward(prepared, input_ids, attention_mask, cfg):
    B, S = input_ids.shape
    H = cfg.hidden

    # ---- Embeddings (gathers are glue JAX; LayerNorm is a Pallas kernel) ----
    word = jnp.take(prepared["word_emb"], input_ids, axis=0)        # [B, S, H]
    pos = prepared["pos_emb"][:S][None, :, :]                       # [1, S, H]
    tok = prepared["type_emb"][0][None, None, :]                    # token_type_ids == 0
    emb = (word + pos + tok).astype(_BF16)                          # bf16 at kernel boundary
    h2d = layernorm_rows(emb.reshape(B * S, H),
                         prepared["emb_ln_g"], prepared["emb_ln_b"])    # [B*S, H] bf16

    # Additive attention mask, HF-style: (1 - mask) * -10000, shaped [B, 1, S], f32.
    add_mask = (1.0 - attention_mask.astype(jnp.float32))[:, None, :] * -10000.0

    # ---- Transformer encoder: 2 fused pallas_calls per layer ----
    for lp in prepared["layers"]:
        h = attention_block(h2d.reshape(B, S, H), add_mask, lp,
                            num_heads=cfg.num_heads, head_dim=cfg.head_dim)
        h2d = ffn_block(h.reshape(B * S, H), lp)

    # ---- Pooler(tanh) -> Dropout(identity) -> classifier, fused ----
    cls_tok = h2d.reshape(B, S, H)[:, 0, :]                         # [B, H] bf16
    return pooler_classifier(cls_tok, prepared, cfg.num_labels)     # [B, num_labels] f32


# ------------------------------------ Main -------------------------------------

if __name__ == "__main__":
    cfg = Config()
    key = jax.random.PRNGKey(0)
    k_param, k_ids = jax.random.split(key)

    params = init_params(cfg, k_param)
    prepared = prepare_params(params, cfg)

    B, S = 2, 8
    input_ids = jax.random.randint(k_ids, (B, S), 0, cfg.vocab_size, dtype=jnp.int32)
    attention_mask = jnp.ones((B, S), dtype=jnp.int32)
    attention_mask = attention_mask.at[1, 6:].set(0)   # pad the tail of example 1

    fwd = jax.jit(functools.partial(bert_classifier_forward, cfg=cfg))
    logits = fwd(prepared, input_ids, attention_mask)
    logits = jax.block_until_ready(logits)

    assert logits.shape == (B, cfg.num_labels)
    assert bool(jnp.all(jnp.isfinite(logits)))
    print("KERNEL_OK")
</pallas_src>

<mosaic_0001>
module attributes {stable_mosaic.version = 11 : i64} {
  func.func @k(%arg0: i32, %arg1: memref<8x128xf32, #tpu.memory_space<vmem>>, %arg2: memref<8x128xf32, #tpu.memory_space<vmem>>, %arg3: memref<8x128xf32, #tpu.memory_space<vmem>>) attributes {dimension_semantics = [#tpu.dimension_semantics<arbitrary>], iteration_bounds = array<i64: 2>, scalar_prefetch = 0 : i64, scratch_operands = 0 : i64, tpu.core_type = #tpu.core_type<tc>, window_params = [{transform_indices = @transform_0, window_bounds = array<i64: 8, 128>}, {pipeline_mode = #tpu.pipeline_mode<synchronous>, transform_indices = @transform_1, window_bounds = array<i64: 8, 128>}, {transform_indices = @transform_2, window_bounds = array<i64: 8, 128>}]} {
    %c0 = arith.constant 0 : index
    %c0_0 = arith.constant 0 : index
    %0 = vector.load %arg1[%c0, %c0_0] : memref<8x128xf32, #tpu.memory_space<vmem>>, vector<8x128xf32>
    %c0_1 = arith.constant 0 : index
    %c0_2 = arith.constant 0 : index
    %1 = vector.load %arg2[%c0_1, %c0_2] : memref<8x128xf32, #tpu.memory_space<vmem>>, vector<8x128xf32>
    %2 = arith.addf %0, %1 : vector<8x128xf32>
    %c0_3 = arith.constant 0 : index
    %c0_4 = arith.constant 0 : index
    %3 = vector.load %arg3[%c0_3, %c0_4] : memref<8x128xf32, #tpu.memory_space<vmem>>, vector<8x128xf32>
    tpu.vector_store %arg3[%c0_3, %c0_4], %2 {strides = array<i32>} : memref<8x128xf32, #tpu.memory_space<vmem>>, vector<8x128xf32>,
    return
  }
  func.func @transform_0(%arg0: i32) -> (i32, i32) {
    %c0_i32 = arith.constant 0 : i32
    %c0_i32_0 = arith.constant 0 : i32
    return %arg0, %c0_i32 : i32, i32
  }
  func.func @transform_1(%arg0: i32) -> (i32, i32) {
    %c0_i32 = arith.constant 0 : i32
    %c0_i32_0 = arith.constant 0 : i32
    %c0_i32_1 = arith.constant 0 : i32
    return %c0_i32, %c0_i32_0 : i32, i32
  }
  func.func @transform_2(%arg0: i32) -> (i32, i32) {
    %c0_i32 = arith.constant 0 : i32
    %c0_i32_0 = arith.constant 0 : i32
    return %arg0, %c0_i32 : i32, i32
  }
}

module attributes {stable_mosaic.version = 11 : i64} {
  func.func @_attn_block_kernel(%arg0: i32, %arg1: memref<1x8x32xbf16, #tpu.memory_space<vmem>>, %arg2: memref<1x1x8xf32, #tpu.memory_space<vmem>>, %arg3: memref<2x32x48xbf16, #tpu.memory_space<vmem>>, %arg4: memref<2x1x48xf32, #tpu.memory_space<vmem>>, %arg5: memref<2x16x32xbf16, #tpu.memory_space<vmem>>, %arg6: memref<1x32xf32, #tpu.memory_space<vmem>>, %arg7: memref<1x32xf32, #tpu.memory_space<vmem>>, %arg8: memref<1x32xf32, #tpu.memory_space<vmem>>, %arg9: memref<1x8x32xbf16, #tpu.memory_space<vmem>>) attributes {dimension_semantics = [#tpu.dimension_semantics<parallel>], iteration_bounds = array<i64: 2>, scalar_prefetch = 0 : i64, scratch_operands = 0 : i64, tpu.core_type = #tpu.core_type<tc>, window_params = [{transform_indices = @transform_0, window_bounds = array<i64: 1, 8, 32>}, {transform_indices = @transform_1, window_bounds = array<i64: 1, 1, 8>}, {pipeline_mode = #tpu.pipeline_mode<synchronous>, transform_indices = @transform_2, window_bounds = array<i64: 2, 32, 48>}, {pipeline_mode = #tpu.pipeline_mode<synchronous>, transform_indices = @transform_3, window_bounds = array<i64: 2, 1, 48>}, {pipeline_mode = #tpu.pipeline_mode<synchronous>, transform_indices = @transform_4, window_bounds = array<i64: 2, 16, 32>}, {pipeline_mode = #tpu.pipeline_mode<synchronous>, transform_indices = @transform_5, window_bounds = array<i64: 1, 32>}, {pipeline_mode = #tpu.pipeline_mode<synchronous>, transform_indices = @transform_6, window_bounds = array<i64: 1, 32>}, {pipeline_mode = #tpu.pipeline_mode<synchronous>, transform_indices = @transform_7, window_bounds = array<i64: 1, 32>}, {transform_indices = @transform_8, window_bounds = array<i64: 1, 8, 32>}]} {
    %c0 = arith.constant 0 : index
    %c0_0 = arith.constant 0 : index
    %c0_1 = arith.constant 0 : index
    %0 = vector.load %arg1[%c0, %c0_0, %c0_1] : memref<1x8x32xbf16, #tpu.memory_space<vmem>>, vector<1x8x32xbf16>
    %1 = vector.shape_cast %0 : vector<1x8x32xbf16> to vector<8x32xbf16>
    %c0_2 = arith.constant 0 : index
    %c0_3 = arith.constant 0 : index
    %c0_4 = arith.constant 0 : index
    %2 = vector.load %arg2[%c0_2, %c0_3, %c0_4] : memref<1x1x8xf32, #tpu.memory_space<vmem>>, vector<1x1x8xf32>
    %3 = vector.shape_cast %2 : vector<1x1x8xf32> to vector<1x8xf32>
    %cst = arith.constant 0.000000e+00 : f32
    %4 = vector.broadcast %cst : f32 to vector<8x32xf32>
    %c0_i32 = arith.constant 0 : i32
    %5 = arith.index_cast %c0_i32 : i32 to index
    %c0_5 = arith.constant 0 : index
    %c0_6 = arith.constant 0 : index
    %6 = vector.load %arg3[%5, %c0_5, %c0_6] : memref<2x32x48xbf16, #tpu.memory_space<vmem>>, vector<1x32x48xbf16>
    %7 = vector.shape_cast %6 : vector<1x32x48xbf16> to vector<32x48xbf16>
    %cst_7 = arith.constant dense<0.000000e+00> : vector<8x48xf32>
    %8 = tpu.matmul %1, %7, %cst_7 {dimension_numbers = #tpu.dot_dimension_numbers<[1], [0], [0], [1], [0, 0, 1, 1], [], []>} : vector<8x32xbf16>, vector<32x48xbf16>, vector<8x48xf32> -> vector<8x48xf32>
    %9 = arith.index_cast %c0_i32 : i32 to index
    %c0_8 = arith.constant 0 : index
    %c0_9 = arith.constant 0 : index
    %10 = vector.load %arg4[%9, %c0_8, %c0_9] : memref<2x1x48xf32, #tpu.memory_space<vmem>>, vector<1x1x48xf32>
    %11 = vector.shape_cast %10 : vector<1x1x48xf32> to vector<1x48xf32>
    %12 = vector.broadcast %11 : vector<1x48xf32> to vector<8x48xf32>
    %13 = arith.addf %8, %12 : vector<8x48xf32>
    %14 = vector.extract_strided_slice %13 {offsets = [0, 0], sizes = [8, 16], strides = [1, 1]} : vector<8x48xf32> to vector<8x16xf32>
    %cst_10 = arith.constant 2.500000e-01 : f32
    %15 = vector.broadcast %cst_10 : f32 to vector<8x16xf32>
    %16 = arith.mulf %14, %15 : vector<8x16xf32>
    %17 = arith.truncf %16 : vector<8x16xf32> to vector<8x16xbf16>
    %18 = vector.extract_strided_slice %13 {offsets = [0, 16], sizes = [8, 16], strides = [1, 1]} : vector<8x48xf32> to vector<8x16xf32>
    %19 = arith.truncf %18 : vector<8x16xf32> to vector<8x16xbf16>
    %20 = vector.extract_strided_slice %13 {offsets = [0, 32], sizes = [8, 16], strides = [1, 1]} : vector<8x48xf32> to vector<8x16xf32>
    %21 = arith.truncf %20 : vector<8x16xf32> to vector<8x16xbf16>
    %cst_11 = arith.constant dense<0.000000e+00> : vector<8x8xf32>
    %22 = tpu.matmul %17, %19, %cst_11 {dimension_numbers = #tpu.dot_dimension_numbers<[1], [1], [0], [0], [0, 0, 1, 0], [], []>} : vector<8x16xbf16>, vector<8x16xbf16>, vector<8x8xf32> -> vector<8x8xf32>
    %23 = vector.broadcast %3 : vector<1x8xf32> to vector<8x8xf32>
    %24 = arith.addf %22, %23 : vector<8x8xf32>
    %cst_12 = arith.constant dense<0xFF800000> : vector<8xf32>
    %25 = vector.multi_reduction <maximumf>, %24, %cst_12 [1] : vector<8x8xf32> to vector<8xf32>
    %26 = vector.shape_cast %25 : vector<8xf32> to vector<8x1xf32>
    %27 = vector.broadcast %26 : vector<8x1xf32> to vector<8x8xf32>
    %28 = arith.subf %24, %27 : vector<8x8xf32>
    %29 = math.exp %28 : vector<8x8xf32>
    %cst_13 = arith.constant dense<0.000000e+00> : vector<8xf32>
    %30 = vector.multi_reduction <add>, %29, %cst_13 [1] : vector<8x8xf32> to vector<8xf32>
    %31 = vector.shape_cast %30 : vector<8xf32> to vector<8x1xf32>
    %32 = tpu.reciprocal %31 {approx = true} : vector<8x1xf32> -> vector<8x1xf32>
    %33 = vector.broadcast %32 : vector<8x1xf32> to vector<8x8xf32>
    %34 = arith.mulf %29, %33 : vector<8x8xf32>
    %35 = arith.truncf %34 : vector<8x8xf32> to vector<8x8xbf16>
    %cst_14 = arith.constant dense<0.000000e+00> : vector<8x16xf32>
    %36 = tpu.matmul %35, %21, %cst_14 {dimension_numbers = #tpu.dot_dimension_numbers<[1], [0], [0], [1], [0, 0, 1, 1], [], []>} : vector<8x8xbf16>, vector<8x16xbf16>, vector<8x16xf32> -> vector<8x16xf32>
    %37 = arith.truncf %36 : vector<8x16xf32> to vector<8x16xbf16>
    %38 = arith.index_cast %c0_i32 : i32 to index
    %c0_15 = arith.constant 0 : index
    %c0_16 = arith.constant 0 : index
    %39 = vector.load %arg5[%38, %c0_15, %c0_16] : memref<2x16x32xbf16, #tpu.memory_space<vmem>>, vector<1x16x32xbf16>
    %40 = vector.shape_cast %39 : vector<1x16x32xbf16> to vector<16x32xbf16>
    %cst_17 = arith.constant dense<0.000000e+00> : vector<8x32xf32>
    %41 = tpu.matmul %37, %40, %cst_17 {dimension_numbers = #tpu.dot_dimension_numbers<[1], [0], [0], [1], [0, 0, 1, 1], [], []>} : vector<8x16xbf16>, vector<16x32xbf16>, vector<8x32xf32> -> vector<8x32xf32>
    %42 = arith.addf %4, %41 : vector<8x32xf32>
    %c1_i32 = arith.constant 1 : i32
    %43 = arith.index_cast %c1_i32 : i32 to index
    %c0_18 = arith.constant 0 : index
    %c0_19 = arith.constant 0 : index
    %44 = vector.load %arg3[%43, %c0_18, %c0_19] : memref<2x32x48xbf16, #tpu.memory_space<vmem>>, vector<1x32x48xbf16>
    %45 = vector.shape_cast %44 : vector<1x32x48xbf16> to vector<32x48xbf16>
    %cst_20 = arith.constant dense<0.000000e+00> : vector<8x48xf32>
    %46 = tpu.matmul %1, %45, %cst_20 {dimension_numbers = #tpu.dot_dimension_numbers<[1], [0], [0], [1], [0, 0, 1, 1], [], []>} : vector<8x32xbf16>, vector<32x48xbf16>, vector<8x48xf32> -> vector<8x48xf32>
    %47 = arith.index_cast %c1_i32 : i32 to index
    %c0_21 = arith.constant 0 : index
    %c0_22 = arith.constant 0 : index
    %48 = vector.load %arg4[%47, %c0_21, %c0_22] : memref<2x1x48xf32, #tpu.memory_space<vmem>>, vector<1x1x48xf32>
    %49 = vector.shape_cast %48 : vector<1x1x48xf32> to vector<1x48xf32>
    %50 = vector.broadcast %49 : vector<1x48xf32> to vector<8x48xf32>
    %51 = arith.addf %46, %50 : vector<8x48xf32>
    %52 = vector.extract_strided_slice %51 {offsets = [0, 0], sizes = [8, 16], strides = [1, 1]} : vector<8x48xf32> to vector<8x16xf32>
    %cst_23 = arith.constant 2.500000e-01 : f32
    %53 = vector.broadcast %cst_23 : f32 to vector<8x16xf32>
    %54 = arith.mulf %52, %53 : vector<8x16xf32>
    %55 = arith.truncf %54 : vector<8x16xf32> to vector<8x16xbf16>
    %56 = vector.extract_strided_slice %51 {offsets = [0, 16], sizes = [8, 16], strides = [1, 1]} : vector<8x48xf32> to vector<8x16xf32>
    %57 = arith.truncf %56 : vector<8x16xf32> to vector<8x16xbf16>
    %58 = vector.extract_strided_slice %51 {offsets = [0, 32], sizes = [8, 16], strides = [1, 1]} : vector<8x48xf32> to vector<8x16xf32>
    %59 = arith.truncf %58 : vector<8x16xf32> to vector<8x16xbf16>
    %cst_24 = arith.constant dense<0.000000e+00> : vector<8x8xf32>
    %60 = tpu.matmul %55, %57, %cst_24 {dimension_numbers = #tpu.dot_dimension_numbers<[1], [1], [0], [0], [0, 0, 1, 0], [], []>} : vector<8x16xbf16>, vector<8x16xbf16>, vector<8x8xf32> -> vector<8x8xf32>
    %61 = vector.broadcast %3 : vector<1x8xf32> to vector<8x8xf32>
    %62 = arith.addf %60, %61 : vector<8x8xf32>
    %cst_25 = arith.constant dense<0xFF800000> : vector<8xf32>
    %63 = vector.multi_reduction <maximumf>, %62, %cst_25 [1] : vector<8x8xf32> to vector<8xf32>
    %64 = vector.shape_cast %63 : vector<8xf32> to vector<8x1xf32>
    %65 = vector.broadcast %64 : vector<8x1xf32> to vector<8x8xf32>
    %66 = arith.subf %62, %65 : vector<8x8xf32>
    %67 = math.exp %66 : vector<8x8xf32>
    %cst_26 = arith.constant dense<0.000000e+00> : vector<8xf32>
    %68 = vector.multi_reduction <add>, %67, %cst_26 [1] : vector<8x8xf32> to vector<8xf32>
    %69 = vector.shape_cast %68 : vector<8xf32> to vector<8x1xf32>
    %70 = tpu.reciprocal %69 {approx = true} : vector<8x1xf32> -> vector<8x1xf32>
    %71 = vector.broadcast %70 : vector<8x1xf32> to vector<8x8xf32>
    %72 = arith.mulf %67, %71 : vector<8x8xf32>
    %73 = arith.truncf %72 : vector<8x8xf32> to vector<8x8xbf16>
    %cst_27 = arith.constant dense<0.000000e+00> : vector<8x16xf32>
    %74 = tpu.matmul %73, %59, %cst_27 {dimension_numbers = #tpu.dot_dimension_numbers<[1], [0], [0], [1], [0, 0, 1, 1], [], []>} : vector<8x8xbf16>, vector<8x16xbf16>, vector<8x16xf32> -> vector<8x16xf32>
    %75 = arith.truncf %74 : vector<8x16xf32> to vector<8x16xbf16>
    %76 = arith.index_cast %c1_i32 : i32 to index
    %c0_28 = arith.constant 0 : index
    %c0_29 = arith.constant 0 : index
    %77 = vector.load %arg5[%76, %c0_28, %c0_29] : memref<2x16x32xbf16, #tpu.memory_space<vmem>>, vector<1x16x32xbf16>
    %78 = vector.shape_cast %77 : vector<1x16x32xbf16> to vector<16x32xbf16>
    %cst_30 = arith.constant dense<0.000000e+00> : vector<8x32xf32>
    %79 = tpu.matmul %75, %78, %cst_30 {dimension_numbers = #tpu.dot_dimension_numbers<[1], [0], [0], [1], [0, 0, 1, 1], [], []>} : vector<8x16xbf16>, vector<16x32xbf16>, vector<8x32xf32> -> vector<8x32xf32>
    %80 = arith.addf %42, %79 : vector<8x32xf32>
    %c2_i32 = arith.constant 2 : i32
    %c0_31 = arith.constant 0 : index
    %c0_32 = arith.constant 0 : index
    %81 = vector.load %arg6[%c0_31, %c0_32] : memref<1x32xf32, #tpu.memory_space<vmem>>, vector<1x32xf32>
    %82 = vector.broadcast %81 : vector<1x32xf32> to vector<8x32xf32>
    %83 = arith.addf %80, %82 : vector<8x32xf32>
    %84 = arith.extf %1 : vector<8x32xbf16> to vector<8x32xf32>
    %85 = arith.addf %83, %84 : vector<8x32xf32>
    %c0_33 = arith.constant 0 : index
    %c0_34 = arith.constant 0 : index
    %86 = vector.load %arg7[%c0_33, %c0_34] : memref<1x32xf32, #tpu.memory_space<vmem>>, vector<1x32xf32>
    %c0_35 = arith.constant 0 : index
    %c0_36 = arith.constant 0 : index
    %87 = vector.load %arg8[%c0_35, %c0_36] : memref<1x32xf32, #tpu.memory_space<vmem>>, vector<1x32xf32>
    %cst_37 = arith.constant dense<0.000000e+00> : vector<8xf32>
    %88 = vector.multi_reduction <add>, %85, %cst_37 [1] : vector<8x32xf32> to vector<8xf32>
    %89 = vector.shape_cast %88 : vector<8xf32> to vector<8x1xf32>
    %cst_38 = arith.constant 3.200000e+01 : f32
    %90 = vector.broadcast %cst_38 : f32 to vector<8x1xf32>
    %91 = arith.divf %89, %90 : vector<8x1xf32>
    %92 = vector.broadcast %91 : vector<8x1xf32> to vector<8x32xf32>
    %93 = arith.subf %85, %92 : vector<8x32xf32>
    %94 = arith.mulf %93, %93 : vector<8x32xf32>
    %cst_39 = arith.constant dense<0.000000e+00> : vector<8xf32>
    %95 = vector.multi_reduction <add>, %94, %cst_39 [1] : vector<8x32xf32> to vector<8xf32>
    %96 = vector.shape_cast %95 : vector<8xf32> to vector<8x1xf32>
    %cst_40 = arith.constant 3.200000e+01 : f32
    %97 = vector.broadcast %cst_40 : f32 to vector<8x1xf32>
    %98 = arith.divf %96, %97 : vector<8x1xf32>
    %99 = vector.broadcast %91 : vector<8x1xf32> to vector<8x32xf32>
    %100 = arith.subf %85, %99 : vector<8x32xf32>
    %cst_41 = arith.constant 9.99999996E-13 : f32
    %101 = vector.broadcast %cst_41 : f32 to vector<8x1xf32>
    %102 = arith.addf %98, %101 : vector<8x1xf32>
    %103 = math.rsqrt %102 : vector<8x1xf32>
    %104 = vector.broadcast %103 : vector<8x1xf32> to vector<8x32xf32>
    %105 = arith.mulf %100, %104 : vector<8x32xf32>
    %106 = vector.broadcast %86 : vector<1x32xf32> to vector<8x32xf32>
    %107 = arith.mulf %105, %106 : vector<8x32xf32>
    %108 = vector.broadcast %87 : vector<1x32xf32> to vector<8x32xf32>
    %109 = arith.addf %107, %108 : vector<8x32xf32>
    %110 = arith.truncf %109 : vector<8x32xf32> to vector<8x32xbf16>
    %c0_42 = arith.constant 0 : index
    %c0_43 = arith.constant 0 : index
    %c0_44 = arith.constant 0 : index
    %111 = vector.load %arg9[%c0_42, %c0_43, %c0_44] : memref<1x8x32xbf16, #tpu.memory_space<vmem>>, vector<1x8x32xbf16>
    %112 = vector.shape_cast %111 : vector<1x8x32xbf16> to vector<8x32xbf16>
    %113 = vector.shape_cast %110 : vector<8x32xbf16> to vector<1x8x32xbf16>
    tpu.vector_store %arg9[%c0_42, %c0_43, %c0_44], %113 {strides = array<i32>} : memref<1x8x32xbf16, #tpu.memory_space<vmem>>, vector<1x8x32xbf16>,
    return
  }
  func.func @transform_0(%arg0: i32) -> (i32, i32, i32) {
    %c0_i32 = arith.constant 0 : i32
    %c0_i32_0 = arith.constant 0 : i32
    %c0_i32_1 = arith.constant 0 : i32
    return %arg0, %c0_i32, %c0_i32_0 : i32, i32, i32
  }
  func.func @transform_1(%arg0: i32) -> (i32, i32, i32) {
    %c0_i32 = arith.constant 0 : i32
    %c0_i32_0 = arith.constant 0 : i32
    %c0_i32_1 = arith.constant 0 : i32
    return %arg0, %c0_i32, %c0_i32_0 : i32, i32, i32
  }
  func.func @transform_2(%arg0: i32) -> (i32, i32, i32) {
    %c0_i32 = arith.constant 0 : i32
    %c0_i32_0 = arith.constant 0 : i32
    %c0_i32_1 = arith.constant 0 : i32
    %c0_i32_2 = arith.constant 0 : i32
    return %c0_i32, %c0_i32_0, %c0_i32_1 : i32, i32, i32
  }
  func.func @transform_3(%arg0: i32) -> (i32, i32, i32) {
    %c0_i32 = arith.constant 0 : i32
    %c0_i32_0 = arith.constant 0 : i32
    %c0_i32_1 = arith.constant 0 : i32
    %c0_i32_2 = arith.constant 0 : i32
    return %c0_i32, %c0_i32_0, %c0_i32_1 : i32, i32, i32
  }
  func.func @transform_4(%arg0: i32) -> (i32, i32, i32) {
    %c0_i32 = arith.constant 0 : i32
    %c0_i32_0 = arith.constant 0 : i32
    %c0_i32_1 = arith.constant 0 : i32
    %c0_i32_2 = arith.constant 0 : i32
    return %c0_i32, %c0_i32_0, %c0_i32_1 : i32, i32, i32
  }
  func.func @transform_5(%arg0: i32) -> (i32, i32) {
    %c0_i32 = arith.constant 0 : i32
    %c0_i32_0 = arith.constant 0 : i32
    %c0_i32_1 = arith.constant 0 : i32
    return %c0_i32, %c0_i32_0 : i32, i32
  }
  func.func @transform_6(%arg0: i32) -> (i32, i32) {
    %c0_i32 = arith.constant 0 : i32
    %c0_i32_0 = arith.constant 0 : i32
    %c0_i32_1 = arith.constant 0 : i32
    return %c0_i32, %c0_i32_0 : i32, i32
  }
  func.func @transform_7(%arg0: i32) -> (i32, i32) {
    %c0_i32 = arith.constant 0 : i32
    %c0_i32_0 = arith.constant 0 : i32
    %c0_i32_1 = arith.constant 0 : i32
    return %c0_i32, %c0_i32_0 : i32, i32
  }
  func.func @transform_8(%arg0: i32) -> (i32, i32, i32) {
    %c0_i32 = arith.constant 0 : i32
    %c0_i32_0 = arith.constant 0 : i32
    %c0_i32_1 = arith.constant 0 : i32
    return %arg0, %c0_i32, %c0_i32_0 : i32, i32, i32
  }
}

module attributes {stable_mosaic.version = 11 : i64} {
  func.func @_layernorm_kernel(%arg0: i32, %arg1: memref<8x32xbf16, #tpu.memory_space<vmem>>, %arg2: memref<1x32xf32, #tpu.memory_space<vmem>>, %arg3: memref<1x32xf32, #tpu.memory_space<vmem>>, %arg4: memref<8x32xbf16, #tpu.memory_space<vmem>>) attributes {dimension_semantics = [#tpu.dimension_semantics<parallel>], iteration_bounds = array<i64: 2>, scalar_prefetch = 0 : i64, scratch_operands = 0 : i64, tpu.core_type = #tpu.core_type<tc>, window_params = [{transform_indices = @transform_0, window_bounds = array<i64: 8, 32>}, {pipeline_mode = #tpu.pipeline_mode<synchronous>, transform_indices = @transform_1, window_bounds = array<i64: 1, 32>}, {pipeline_mode = #tpu.pipeline_mode<synchronous>, transform_indices = @transform_2, window_bounds = array<i64: 1, 32>}, {transform_indices = @transform_3, window_bounds = array<i64: 8, 32>}]} {
    %c0 = arith.constant 0 : index
    %c0_0 = arith.constant 0 : index
    %0 = vector.load %arg1[%c0, %c0_0] : memref<8x32xbf16, #tpu.memory_space<vmem>>, vector<8x32xbf16>
    %1 = arith.extf %0 : vector<8x32xbf16> to vector<8x32xf32>
    %c0_1 = arith.constant 0 : index
    %c0_2 = arith.constant 0 : index
    %2 = vector.load %arg2[%c0_1, %c0_2] : memref<1x32xf32, #tpu.memory_space<vmem>>, vector<1x32xf32>
    %c0_3 = arith.constant 0 : index
    %c0_4 = arith.constant 0 : index
    %3 = vector.load %arg3[%c0_3, %c0_4] : memref<1x32xf32, #tpu.memory_space<vmem>>, vector<1x32xf32>
    %cst = arith.constant dense<0.000000e+00> : vector<8xf32>
    %4 = vector.multi_reduction <add>, %1, %cst [1] : vector<8x32xf32> to vector<8xf32>
    %5 = vector.shape_cast %4 : vector<8xf32> to vector<8x1xf32>
    %cst_5 = arith.constant 3.200000e+01 : f32
    %6 = vector.broadcast %cst_5 : f32 to vector<8x1xf32>
    %7 = arith.divf %5, %6 : vector<8x1xf32>
    %8 = vector.broadcast %7 : vector<8x1xf32> to vector<8x32xf32>
    %9 = arith.subf %1, %8 : vector<8x32xf32>
    %10 = arith.mulf %9, %9 : vector<8x32xf32>
    %cst_6 = arith.constant dense<0.000000e+00> : vector<8xf32>
    %11 = vector.multi_reduction <add>, %10, %cst_6 [1] : vector<8x32xf32> to vector<8xf32>
    %12 = vector.shape_cast %11 : vector<8xf32> to vector<8x1xf32>
    %cst_7 = arith.constant 3.200000e+01 : f32
    %13 = vector.broadcast %cst_7 : f32 to vector<8x1xf32>
    %14 = arith.divf %12, %13 : vector<8x1xf32>
    %15 = vector.broadcast %7 : vector<8x1xf32> to vector<8x32xf32>
    %16 = arith.subf %1, %15 : vector<8x32xf32>
    %cst_8 = arith.constant 9.99999996E-13 : f32
    %17 = vector.broadcast %cst_8 : f32 to vector<8x1xf32>
    %18 = arith.addf %14, %17 : vector<8x1xf32>
    %19 = math.rsqrt %18 : vector<8x1xf32>
    %20 = vector.broadcast %19 : vector<8x1xf32> to vector<8x32xf32>
    %21 = arith.mulf %16, %20 : vector<8x32xf32>
    %22 = vector.broadcast %2 : vector<1x32xf32> to vector<8x32xf32>
    %23 = arith.mulf %21, %22 : vector<8x32xf32>
    %24 = vector.broadcast %3 : vector<1x32xf32> to vector<8x32xf32>
    %25 = arith.addf %23, %24 : vector<8x32xf32>
    %26 = arith.truncf %25 : vector<8x32xf32> to vector<8x32xbf16>
    %c0_9 = arith.constant 0 : index
    %c0_10 = arith.constant 0 : index
    %27 = vector.load %arg4[%c0_9, %c0_10] : memref<8x32xbf16, #tpu.memory_space<vmem>>, vector<8x32xbf16>
    tpu.vector_store %arg4[%c0_9, %c0_10], %26 {strides = array<i32>} : memref<8x32xbf16, #tpu.memory_space<vmem>>, vector<8x32xbf16>,
    return
  }
  func.func @transform_0(%arg0: i32) -> (i32, i32) {
    %c0_i32 = arith.constant 0 : i32
    %c0_i32_0 = arith.constant 0 : i32
    return %arg0, %c0_i32 : i32, i32
  }
  func.func @transform_1(%arg0: i32) -> (i32, i32) {
    %c0_i32 = arith.constant 0 : i32
    %c0_i32_0 = arith.constant 0 : i32
    %c0_i32_1 = arith.constant 0 : i32
    return %c0_i32, %c0_i32_0 : i32, i32
  }
  func.func @transform_2(%arg0: i32) -> (i32, i32) {
    %c0_i32 = arith.constant 0 : i32
    %c0_i32_0 = arith.constant 0 : i32
    %c0_i32_1 = arith.constant 0 : i32
    return %c0_i32, %c0_i32_0 : i32, i32
  }
  func.func @transform_3(%arg0: i32) -> (i32, i32) {
    %c0_i32 = arith.constant 0 : i32
    %c0_i32_0 = arith.constant 0 : i32
    return %arg0, %c0_i32 : i32, i32
  }
}

module attributes {stable_mosaic.version = 11 : i64} {
  func.func @_ffn_block_kernel(%arg0: i32, %arg1: memref<8x32xbf16, #tpu.memory_space<vmem>>, %arg2: memref<32x64xbf16, #tpu.memory_space<vmem>>, %arg3: memref<1x64xf32, #tpu.memory_space<vmem>>, %arg4: memref<64x32xbf16, #tpu.memory_space<vmem>>, %arg5: memref<1x32xf32, #tpu.memory_space<vmem>>, %arg6: memref<1x32xf32, #tpu.memory_space<vmem>>, %arg7: memref<1x32xf32, #tpu.memory_space<vmem>>, %arg8: memref<8x32xbf16, #tpu.memory_space<vmem>>) attributes {dimension_semantics = [#tpu.dimension_semantics<parallel>], iteration_bounds = array<i64: 2>, scalar_prefetch = 0 : i64, scratch_operands = 0 : i64, tpu.core_type = #tpu.core_type<tc>, window_params = [{transform_indices = @transform_0, window_bounds = array<i64: 8, 32>}, {pipeline_mode = #tpu.pipeline_mode<synchronous>, transform_indices = @transform_1, window_bounds = array<i64: 32, 64>}, {pipeline_mode = #tpu.pipeline_mode<synchronous>, transform_indices = @transform_2, window_bounds = array<i64: 1, 64>}, {pipeline_mode = #tpu.pipeline_mode<synchronous>, transform_indices = @transform_3, window_bounds = array<i64: 64, 32>}, {pipeline_mode = #tpu.pipeline_mode<synchronous>, transform_indices = @transform_4, window_bounds = array<i64: 1, 32>}, {pipeline_mode = #tpu.pipeline_mode<synchronous>, transform_indices = @transform_5, window_bounds = array<i64: 1, 32>}, {pipeline_mode = #tpu.pipeline_mode<synchronous>, transform_indices = @transform_6, window_bounds = array<i64: 1, 32>}, {transform_indices = @transform_7, window_bounds = array<i64: 8, 32>}]} {
    %c0 = arith.constant 0 : index
    %c0_0 = arith.constant 0 : index
    %0 = vector.load %arg1[%c0, %c0_0] : memref<8x32xbf16, #tpu.memory_space<vmem>>, vector<8x32xbf16>
    %c0_1 = arith.constant 0 : index
    %c0_2 = arith.constant 0 : index
    %1 = vector.load %arg2[%c0_1, %c0_2] : memref<32x64xbf16, #tpu.memory_space<vmem>>, vector<32x64xbf16>
    %cst = arith.constant dense<0.000000e+00> : vector<8x64xf32>
    %2 = tpu.matmul %0, %1, %cst {dimension_numbers = #tpu.dot_dimension_numbers<[1], [0], [0], [1], [0, 0, 1, 1], [], []>} : vector<8x32xbf16>, vector<32x64xbf16>, vector<8x64xf32> -> vector<8x64xf32>
    %c0_3 = arith.constant 0 : index
    %c0_4 = arith.constant 0 : index
    %3 = vector.load %arg3[%c0_3, %c0_4] : memref<1x64xf32, #tpu.memory_space<vmem>>, vector<1x64xf32>
    %4 = vector.broadcast %3 : vector<1x64xf32> to vector<8x64xf32>
    %5 = arith.addf %2, %4 : vector<8x64xf32>
    %cst_5 = arith.constant 5.000000e-01 : f32
    %6 = vector.broadcast %cst_5 : f32 to vector<8x64xf32>
    %7 = arith.mulf %6, %5 : vector<8x64xf32>
    %cst_6 = arith.constant 4.471500e-02 : f32
    %8 = vector.broadcast %cst_6 : f32 to vector<8x64xf32>
    %9 = arith.mulf %8, %5 : vector<8x64xf32>
    %10 = arith.mulf %9, %5 : vector<8x64xf32>
    %11 = arith.mulf %10, %5 : vector<8x64xf32>
    %12 = arith.addf %5, %11 : vector<8x64xf32>
    %cst_7 = arith.constant 0.797884583 : f32
    %13 = vector.broadcast %cst_7 : f32 to vector<8x64xf32>
    %14 = arith.mulf %13, %12 : vector<8x64xf32>
    %15 = math.tanh %14 : vector<8x64xf32>
    %cst_8 = arith.constant 1.000000e+00 : f32
    %16 = vector.broadcast %cst_8 : f32 to vector<8x64xf32>
    %17 = arith.addf %16, %15 : vector<8x64xf32>
    %18 = arith.mulf %7, %17 : vector<8x64xf32>
    %19 = arith.truncf %18 : vector<8x64xf32> to vector<8x64xbf16>
    %c0_9 = arith.constant 0 : index
    %c0_10 = arith.constant 0 : index
    %20 = vector.load %arg4[%c0_9, %c0_10] : memref<64x32xbf16, #tpu.memory_space<vmem>>, vector<64x32xbf16>
    %cst_11 = arith.constant dense<0.000000e+00> : vector<8x32xf32>
    %21 = tpu.matmul %19, %20, %cst_11 {dimension_numbers = #tpu.dot_dimension_numbers<[1], [0], [0], [1], [0, 0, 1, 1], [], []>} : vector<8x64xbf16>, vector<64x32xbf16>, vector<8x32xf32> -> vector<8x32xf32>
    %c0_12 = arith.constant 0 : index
    %c0_13 = arith.constant 0 : index
    %22 = vector.load %arg5[%c0_12, %c0_13] : memref<1x32xf32, #tpu.memory_space<vmem>>, vector<1x32xf32>
    %23 = vector.broadcast %22 : vector<1x32xf32> to vector<8x32xf32>
    %24 = arith.addf %21, %23 : vector<8x32xf32>
    %25 = arith.extf %0 : vector<8x32xbf16> to vector<8x32xf32>
    %26 = arith.addf %24, %25 : vector<8x32xf32>
    %c0_14 = arith.constant 0 : index
    %c0_15 = arith.constant 0 : index
    %27 = vector.load %arg6[%c0_14, %c0_15] : memref<1x32xf32, #tpu.memory_space<vmem>>, vector<1x32xf32>
    %c0_16 = arith.constant 0 : index
    %c0_17 = arith.constant 0 : index
    %28 = vector.load %arg7[%c0_16, %c0_17] : memref<1x32xf32, #tpu.memory_space<vmem>>, vector<1x32xf32>
    %cst_18 = arith.constant dense<0.000000e+00> : vector<8xf32>
    %29 = vector.multi_reduction <add>, %26, %cst_18 [1] : vector<8x32xf32> to vector<8xf32>
    %30 = vector.shape_cast %29 : vector<8xf32> to vector<8x1xf32>
    %cst_19 = arith.constant 3.200000e+01 : f32
    %31 = vector.broadcast %cst_19 : f32 to vector<8x1xf32>
    %32 = arith.divf %30, %31 : vector<8x1xf32>
    %33 = vector.broadcast %32 : vector<8x1xf32> to vector<8x32xf32>
    %34 = arith.subf %26, %33 : vector<8x32xf32>
    %35 = arith.mulf %34, %34 : vector<8x32xf32>
    %cst_20 = arith.constant dense<0.000000e+00> : vector<8xf32>
    %36 = vector.multi_reduction <add>, %35, %cst_20 [1] : vector<8x32xf32> to vector<8xf32>
    %37 = vector.shape_cast %36 : vector<8xf32> to vector<8x1xf32>
    %cst_21 = arith.constant 3.200000e+01 : f32
    %38 = vector.broadcast %cst_21 : f32 to vector<8x1xf32>
    %39 = arith.divf %37, %38 : vector<8x1xf32>
    %40 = vector.broadcast %32 : vector<8x1xf32> to vector<8x32xf32>
    %41 = arith.subf %26, %40 : vector<8x32xf32>
    %cst_22 = arith.constant 9.99999996E-13 : f32
    %42 = vector.broadcast %cst_22 : f32 to vector<8x1xf32>
    %43 = arith.addf %39, %42 : vector<8x1xf32>
    %44 = math.rsqrt %43 : vector<8x1xf32>
    %45 = vector.broadcast %44 : vector<8x1xf32> to vector<8x32xf32>
    %46 = arith.mulf %41, %45 : vector<8x32xf32>
    %47 = vector.broadcast %27 : vector<1x32xf32> to vector<8x32xf32>
    %48 = arith.mulf %46, %47 : vector<8x32xf32>
    %49 = vector.broadcast %28 : vector<1x32xf32> to vector<8x32xf32>
    %50 = arith.addf %48, %49 : vector<8x32xf32>
    %51 = arith.truncf %50 : vector<8x32xf32> to vector<8x32xbf16>
    %c0_23 = arith.constant 0 : index
    %c0_24 = arith.constant 0 : index
    %52 = vector.load %arg8[%c0_23, %c0_24] : memref<8x32xbf16, #tpu.memory_space<vmem>>, vector<8x32xbf16>
    tpu.vector_store %arg8[%c0_23, %c0_24], %51 {strides = array<i32>} : memref<8x32xbf16, #tpu.memory_space<vmem>>, vector<8x32xbf16>,
    return
  }
  func.func @transform_0(%arg0: i32) -> (i32, i32) {
    %c0_i32 = arith.constant 0 : i32
    %c0_i32_0 = arith.constant 0 : i32
    return %arg0, %c0_i32 : i32, i32
  }
  func.func @transform_1(%arg0: i32) -> (i32, i32) {
    %c0_i32 = arith.constant 0 : i32
    %c0_i32_0 = arith.constant 0 : i32
    %c0_i32_1 = arith.constant 0 : i32
    return %c0_i32, %c0_i32_0 : i32, i32
  }
  func.func @transform_2(%arg0: i32) -> (i32, i32) {
    %c0_i32 = arith.constant 0 : i32
    %c0_i32_0 = arith.constant 0 : i32
    %c0_i32_1 = arith.constant 0 : i32
    return %c0_i32, %c0_i32_0 : i32, i32
  }
  func.func @transform_3(%arg0: i32) -> (i32, i32) {
    %c0_i32 = arith.constant 0 : i32
    %c0_i32_0 = arith.constant 0 : i32
    %c0_i32_1 = arith.constant 0 : i32
    return %c0_i32, %c0_i32_0 : i32, i32
  }
  func.func @transform_4(%arg0: i32) -> (i32, i32) {
    %c0_i32 = arith.constant 0 : i32
    %c0_i32_0 = arith.constant 0 : i32
    %c0_i32_1 = arith.constant 0 : i32
    return %c0_i32, %c0_i32_0 : i32, i32
  }
  func.func @transform_5(%arg0: i32) -> (i32, i32) {
    %c0_i32 = arith.constant 0 : i32
    %c0_i32_0 = arith.constant 0 : i32
    %c0_i32_1 = arith.constant 0 : i32
    return %c0_i32, %c0_i32_0 : i32, i32
  }
  func.func @transform_6(%arg0: i32) -> (i32, i32) {
    %c0_i32 = arith.constant 0 : i32
    %c0_i32_0 = arith.constant 0 : i32
    %c0_i32_1 = arith.constant 0 : i32
    return %c0_i32, %c0_i32_0 : i32, i32
  }
  func.func @transform_7(%arg0: i32) -> (i32, i32) {
    %c0_i32 = arith.constant 0 : i32
    %c0_i32_0 = arith.constant 0 : i32
    return %arg0, %c0_i32 : i32, i32
  }
}

module attributes {stable_mosaic.version = 11 : i64} {
  func.func @_pooler_cls_kernel(%arg0: memref<2x32xbf16, #tpu.memory_space<vmem>>, %arg1: memref<32x32xbf16, #tpu.memory_space<vmem>>, %arg2: memref<1x32xf32, #tpu.memory_space<vmem>>, %arg3: memref<32x128xbf16, #tpu.memory_space<vmem>>, %arg4: memref<1x128xf32, #tpu.memory_space<vmem>>, %arg5: memref<2x128xf32, #tpu.memory_space<vmem>>) attributes {dimension_semantics = [], scalar_prefetch = 0 : i64, scratch_operands = 0 : i64, tpu.core_type = #tpu.core_type<tc>} {
    %c0 = arith.constant 0 : index
    %c0_0 = arith.constant 0 : index
    %0 = vector.load %arg0[%c0, %c0_0] : memref<2x32xbf16, #tpu.memory_space<vmem>>, vector<2x32xbf16>
    %c0_1 = arith.constant 0 : index
    %c0_2 = arith.constant 0 : index
    %1 = vector.load %arg1[%c0_1, %c0_2] : memref<32x32xbf16, #tpu.memory_space<vmem>>, vector<32x32xbf16>
    %cst = arith.constant dense<0.000000e+00> : vector<2x32xf32>
    %2 = tpu.matmul %0, %1, %cst {dimension_numbers = #tpu.dot_dimension_numbers<[1], [0], [0], [1], [0, 0, 1, 1], [], []>} : vector<2x32xbf16>, vector<32x32xbf16>, vector<2x32xf32> -> vector<2x32xf32>
    %c0_3 = arith.constant 0 : index
    %c0_4 = arith.constant 0 : index
    %3 = vector.load %arg2[%c0_3, %c0_4] : memref<1x32xf32, #tpu.memory_space<vmem>>, vector<1x32xf32>
    %4 = vector.broadcast %3 : vector<1x32xf32> to vector<2x32xf32>
    %5 = arith.addf %2, %4 : vector<2x32xf32>
    %6 = math.tanh %5 : vector<2x32xf32>
    %7 = arith.truncf %6 : vector<2x32xf32> to vector<2x32xbf16>
    %c0_5 = arith.constant 0 : index
    %c0_6 = arith.constant 0 : index
    %8 = vector.load %arg3[%c0_5, %c0_6] : memref<32x128xbf16, #tpu.memory_space<vmem>>, vector<32x128xbf16>
    %cst_7 = arith.constant dense<0.000000e+00> : vector<2x128xf32>
    %9 = tpu.matmul %7, %8, %cst_7 {dimension_numbers = #tpu.dot_dimension_numbers<[1], [0], [0], [1], [0, 0, 1, 1], [], []>} : vector<2x32xbf16>, vector<32x128xbf16>, vector<2x128xf32> -> vector<2x128xf32>
    %c0_8 = arith.constant 0 : index
    %c0_9 = arith.constant 0 : index
    %10 = vector.load %arg4[%c0_8, %c0_9] : memref<1x128xf32, #tpu.memory_space<vmem>>, vector<1x128xf32>
    %11 = vector.broadcast %10 : vector<1x128xf32> to vector<2x128xf32>
    %12 = arith.addf %9, %11 : vector<2x128xf32>
    %c0_10 = arith.constant 0 : index
    %c0_11 = arith.constant 0 : index
    %13 = vector.load %arg5[%c0_10, %c0_11] : memref<2x128xf32, #tpu.memory_space<vmem>>, vector<2x128xf32>
    tpu.vector_store %arg5[%c0_10, %c0_11], %12 {strides = array<i32>} : memref<2x128xf32, #tpu.memory_space<vmem>>, vector<2x128xf32>,
    return
  }
}

</mosaic_0001>

<bundles_post_ra>
// kernel: tpu_custom_call.1
= control target key start
LH: loop header
LB: loop body
LE: loop exit
PB: predicated region body
PF: predicated region fallthrough
CT: control target
= control target key end

     0   :  { %7 = vsyncpa [#allocation3], 0  ;;  %s690_s0 = inlined_call_operand.hbm [shape: f32[16,128], index: 0, kind: input, shape index: {}]   ;;  %s691_s1 = inlined_call_operand.hbm [shape: f32[8,128], index: 1, kind: input, shape index: {}]   ;;  %s692_s2 = inlined_call_operand.hbm [shape: f32[16,128], index: 2, kind: output, shape index: {}]  }
   0x1   :  { %9 = vsyncpa [#allocation3 + $0x1], 0 }
   0x2   :  { %10 = vsyncpa [#allocation6], 0 }
   0x3   :  { %11 = vsyncpa [#allocation4], 0 }
   0x4   :  { %13 = vsyncpa [#allocation4 + $0x1], 0  ;;  %s489_s9 = smov 0   ;;  %s491_s10 = smov 0  }
   0x5   :  { %s493_s11 = smov 0   ;;  %s495_s12 = smov 0  }
   0x6 LB: > { %s510_s13 = sadd.s32 4294967295, %s469_s12   ;;  %s270_s14 = sadd.s32 4294967294, %s469_s12   ;;  %s469_s12 = sphi %s495_s12, %s716_s12   ;;  %s465_s11 = sphi %s493_s11, %s715_s11   ;;  %s461_s10 = sphi %s491_s10, %s714_s10   ;;  %s457_s9 = sphi %s489_s9, %s713_s9  }
   0x7   : > { %p39_p0 = scmp.ne.s32.totalorder %s461_s10, %s457_s9  ;;  %p693_p1 = scmp.eq.s32.totalorder %s510_s13, 0 }
   0x8   : > { %p90_p3 = scmp.eq.s32.totalorder %s270_s14, 1  ;;  %p271_p5 = scmp.ge.s32.totalorder %s469_s12, 1 }
   0x9   : > { %p519_p4 = por %p693_p1, %p39_p0  ;;  %p97_p7 = scmp.lt.s32.totalorder %s469_s12, 3 }
   0xa   : > { %p524_p6 = por %p90_p3, %p39_p0  ;;  %s471_s18 = smov [#allocation5]  }
   0xb   : > { %s696_s15 = scalar_select %p519_p4, 1, 0 }
   0xc   : > { %s697_s16 = scalar_select %p524_p6, 1, 0 }
   0xd   : > { %p529_p8 = pnand %p271_p5, %p97_p7  ;;  %s110_s19 = sshll.u32 %s471_s18, 4  ;;  %s111_s19 = int_to_ptr.vmem [resolvable:$true] %s110_s19 }
   0xe   : > { %s537_s20 = sadd.s32 1, %s469_s12   ;;  %s26_s24 = sadd.s32 1, %s465_s11 }
   0xf   : > { %s698_s17 = scalar_select %p529_p8, 1, 0 }
  0x10   : > { %p292_p10 = pneg %p529_p8  ;;  %s23_s22 = ssub.s32 %s469_s12, %s537_s20 }
  0x11   : > { %p547_p12 = scmp.eq.s32.totalorder %s23_s22, 0  ;;  %s341_s27 = scalar_lea.hbm %s691_s1, 128 }
  0x12   : > { %p541_p11 = pnand %p292_p10, %p693_p1  ;;  %p342_p0 = scmp.ne.s32.totalorder %s691_s1, %s341_s27 }
  0x13   : > { %s700_s23 = scalar_select %p547_p12, 1, 0 }
  0x14   : > { %p343_p3 = pneg %p541_p11  ;;  %p348_p10 = scmp.lt.u32.totalorder %s341_s27, %s691_s1 }
  0x16   : > { %p344_p5 = pnand %p343_p3, %p342_p0 }
  0x18   : > { %p345_p7 = pneg %p344_p5 }
  0x1a   : > { %p350_p9 = pnand %p348_p10, %p345_p7 }
  0x1c   : > { %353 = shalt.err (!%p350_p9)
}
  0x1d   : > { %s354_s4 = scalar_lea.vmem %s111_s19, 128  ;;  %p362_p6 = scmp.lt.s32.totalorder %s111_s19, %s111_s19 }
  0x1e   : > { %p355_p1 = scmp.ne.s32.totalorder %s111_s19, %s354_s4  ;;  %p363_p4 = scmp.lt.s32.totalorder %s354_s4, %s354_s4 }
  0x20   : > { %p357_p2 = pnand %p355_p1, %p343_p3  ;;  %p364_p8 = por %p363_p4, %p362_p6 }
  0x22   : > { %p358_p13 = pneg %p357_p2 }
  0x24   : > { %p365_p12 = pnand %p364_p8, %p358_p13 }
  0x26   : > { %368 = shalt.err (!%p365_p12)
}
  0x27   : > { %295 = dma.hbm_to_vmem [thread:$0]  (!%p541_p11), %s691_s1, 128, %s111_s19, [#allocation6]  }
  0x28   : > { %p701_p1 = scmp.ne.s32.totalorder %s700_s23, 0  ;;  %p34_p2 = scmp.eq.s32.totalorder %s469_s12, 0 }
  0x29   : > { %p702_p4 = scmp.ne.s32.totalorder %s465_s11, %s461_s10  ;;  %p703_p6 = scmp.eq.s32.totalorder %s510_s13, 1 }
  0x2a   : > { %s573_s7 = scalar_select %p701_p1, %s465_s11, %s26_s24  }
  0x2b   : > { %p581_p8 = por %p703_p6, %p702_p4  ;;  %p305_p9 = scmp.lt.s32.totalorder %s469_s12, 2 }
  0x2c   : > { %s121_s14 = sand.u32 1, %s465_s11   ;;  %p705_p12 = pmov %p702_p4 }
  0x2d   : > { %s274_s18 = sshll.u32 %s121_s14, 3  ;;  %s275_s21 = sshll.u32 %s469_s12, 7 }
  0x2e   : > { %p35_p13 = por %p34_p2, %p705_p12  ;;  %s594_s19 = scalar_lea.hbm %s690_s0, %s275_s21 }
  0x2f   : > { %s125_s23 = scalar_lea.vmem [#allocation2], %s274_s18  ;;  %s122_s27 = scalar_lea.sflag [#allocation3], %s121_s14 }
  0x30   : > { %s132_s24 = sshll.u32 %s125_s23, 4  ;;  %p596_p11 = pnand %p305_p9, %p35_p13  ;;  %s600_s24 = int_to_ptr.vmem [resolvable:$true] %s132_s24 }
  0x31   : > { %s369_s28 = scalar_lea.hbm %s594_s19, 128  ;;  %s374_s3 = scalar_lea.hbm %s690_s0, 256 }
  0x32   : > { %p370_p0 = scmp.ne.s32.totalorder %s594_s19, %s369_s28  ;;  %p371_p3 = pneg %p596_p11 }
  0x33   : > { %p375_p10 = scmp.lt.u32.totalorder %s594_s19, %s690_s0  ;;  %p376_p1 = scmp.lt.u32.totalorder %s374_s3, %s369_s28 }
  0x34   : > { %p372_p5 = pnand %p371_p3, %p370_p0  ;;  %p378_p4 = scmp.lt.u32.totalorder %s369_s28, %s594_s19 }
  0x35   : > { %p377_p2 = por %p376_p1, %p375_p10 }
  0x36   : > { %p373_p7 = pneg %p372_p5 }
  0x37   : > { %p379_p6 = por %p378_p4, %p377_p2 }
  0x39   : > { %p380_p9 = pnand %p379_p6, %p373_p7 }
  0x3b   : > { %383 = shalt.err (!%p380_p9)
}
  0x3c   : > { %s384_s6 = scalar_lea.vmem %s600_s24, 128  ;;  %s472_s14 = smov [#allocation2]  }
  0x3d   : > { %p385_p12 = scmp.ne.s32.totalorder %s600_s24, %s384_s6  ;;  %s389_s18 = sshll.u32 %s472_s14, 4  ;;  %s390_s18 = int_to_ptr.vmem [resolvable:$false] %s389_s18 }
  0x3e   : > { %s391_s21 = scalar_lea.vmem %s390_s18, 256  ;;  %p392_p5 = scmp.lt.s32.totalorder %s600_s24, %s390_s18 }
  0x3f   : > { %p387_p13 = pnand %p385_p12, %p371_p3  ;;  %p393_p10 = scmp.lt.s32.totalorder %s391_s21, %s384_s6 }
  0x41   : > { %p388_p0 = pneg %p387_p13  ;;  %p394_p1 = por %p393_p10, %p392_p5 }
  0x43   : > { %p395_p2 = pnand %p394_p1, %p388_p0 }
  0x45   : > { %398 = shalt.err (!%p395_p2)
}
  0x46   : > { %299 = dma.hbm_to_vmem [thread:$0]  (!%p596_p11), %s594_s19, 128, %s600_s24, %s122_s27  }
  0x47   : > { %p707_p7 = scmp.ne.s32.totalorder %s698_s17, 0 }
  0x48   : > { %s630_s22 = sand.u32 (!%p707_p7), 1, %s461_s10   ;;  %p708_p3 = scmp.ne.s32.totalorder (!%p707_p7), %s696_s15, 0 }
  0x49   : > { %141 = sbr.rel (%p707_p7) target bundleno = 109 (0x6d), region = 28  ;;  %s277_s25 = sshll.u32 (!%p707_p7), %s630_s22, 3 }
  0x4a   : > { %s144_s23 = scalar_lea.sflag (!%p707_p7), [#allocation3], %s630_s22  ;;  %s147_s28 = scalar_lea.vmem (!%p707_p7), [#allocation2], %s277_s25 }
  0x50   : > { %444 = dma.done.wait (%p708_p3), %s144_s23, 128  }
  0x51   : > { %446 = vsyncadd (%p708_p3), %s144_s23, 4294967168  ;;  %p709_p4 = scmp.eq.s32.totalorder %s510_s13, 0 }
  0x53   : > { %448 = dma.done.wait (%p709_p4), [#allocation6], 128   ;;  %p710_p11 = pmov %p709_p4 }
  0x54   : > { %s171_s17 = scalar_lea.vmem [#allocation7], %s277_s25  ;;  %s281_s24 = sshll.u32 %s510_s13, 7  ;;  %v172_v0 = vld [vmem:[%s147_s28] sm:$0xff]  ;;  %v173_v1 = vld [vmem:[#allocation5] sm:$0xff] }
  0x55   : > { %450 = vsyncadd (%p710_p11), [#allocation6], 4294967168  ;;  %s190_s19 = sshll.u32 %s171_s17, 4  ;;  %v174_v2 = vadd.f32 %v173_v1, %v172_v0  ;;  %s648_s27 = scalar_lea.hbm %s692_s2, %s281_s24  ;;  %s643_s19 = int_to_ptr.vmem [resolvable:$true] %s190_s19 }
  0x56   : > { %s177_s29 = scalar_lea.sflag [#allocation4], %s630_s22  ;;  %s399_s30 = scalar_lea.vmem %s643_s19, 128 }
  0x57   : > { %175 = vst [vmem:[%s171_s17] sm:$0xff] %v174_v2  ;;  %p400_p6 = scmp.ne.s32.totalorder %s643_s19, %s399_s30  ;;  %s473_s13 = smov [#allocation7]  }
  0x58   : > { %s403_s3 = sshll.u32 %s473_s13, 4  ;;  %s404_s3 = int_to_ptr.vmem [resolvable:$false] %s403_s3 }
  0x59   : > { %p401_p9 = pnand %p400_p6, %p581_p8  ;;  %s405_s4 = scalar_lea.vmem %s404_s3, 256 }
  0x5a   : > { %p406_p13 = scmp.lt.s32.totalorder %s643_s19, %s404_s3  ;;  %p407_p0 = scmp.lt.s32.totalorder %s405_s4, %s399_s30 }
  0x5b   : > { %p402_p12 = pneg %p401_p9 }
  0x5c   : > { %p408_p5 = por %p407_p0, %p406_p13 }
  0x5e   : > { %p409_p10 = pnand %p408_p5, %p402_p12 }
  0x60   : > { %412 = shalt.err (!%p409_p10)
}
  0x61   : > { %s413_s5 = scalar_lea.hbm %s648_s27, 128  ;;  %s417_s18 = scalar_lea.hbm %s692_s2, 256 }
  0x62   : > { %p414_p1 = scmp.ne.s32.totalorder %s648_s27, %s413_s5  ;;  %p418_p3 = scmp.lt.u32.totalorder %s648_s27, %s692_s2 }
  0x63   : > { %p419_p4 = scmp.lt.u32.totalorder %s417_s18, %s413_s5  ;;  %p421_p6 = scmp.lt.u32.totalorder %s413_s5, %s648_s27 }
  0x64   : > { %p415_p2 = pnand %p414_p1, %p581_p8 }
  0x65   : > { %p420_p11 = por %p419_p4, %p418_p3 }
  0x66   : > { %p416_p7 = pneg %p415_p2 }
  0x67   : > { %p422_p9 = por %p421_p6, %p420_p11 }
  0x69   : > { %p423_p12 = pnand %p422_p9, %p416_p7 }
  0x6b   : > { %426 = shalt.err (!%p423_p12)
}
  0x6c   : > { %290 = dma.vmem_to_hbm [thread:$0]  (%p581_p8), %s643_s19, 128, %s648_s27, %s177_s29  }
  0x6d PF: > { %s202_s25 = sand.u32 1, %s457_s9   ;;  %p711_p13 = scmp.ne.s32.totalorder %s697_s16, 0 }
  0x6e   : > { %p712_p0 = scmp.ge.s32.totalorder %s469_s12, 2  ;;  %s203_s23 = scalar_lea.sflag [#allocation4], %s202_s25 }
  0x70   : > { %p301_p5 = pnand %p712_p0, %p711_p13 }
  0x72   : > { %452 = dma.done.wait (!%p301_p5), %s203_s23, 128  }
  0x73   : > { %454 = vsyncadd (!%p301_p5), %s203_s23, 4294967168  ;;  %p16_p10 = scmp.ge.s32.totalorder %s537_s20, 4   ;;  %s713_s9 = smov %s461_s10 }
  0x74   : > { %s714_s10 = smov %s465_s11  ;;  %s715_s11 = smov %s573_s7 }
  0x75   : > { %s716_s12 = smov %s537_s20  ;;  %18 = sbr.rel (!%p16_p10) target bundleno = 6 (0x6), region = 77 }
  0x7c   :  { %208 = vsyncpa [#allocation3], 1 }
  0x7d   :  { %210 = vsyncpa [#allocation3 + $0x1], 1 }
  0x7e   :  { %211 = vsyncpa [#allocation6], 1 }
  0x7f   :  { %212 = vsyncpa [#allocation4], 1 }
  0x80   :  { %214 = vsyncpa [#allocation4 + $0x1], 1 }

// kernel: bert_classifier_forward.6
= control target key start
LH: loop header
LB: loop body
LE: loop exit
PB: predicated region body
PF: predicated region fallthrough
CT: control target
= control target key end

     0   :  { %s304_s12 = smov 0   ;;  %s327_s0 = inlined_call_operand.vmem [shape: bf16[16,32], index: 0, kind: input, shape index: {}]   ;;  %s328_s1 = inlined_call_operand.vmem [shape: f32[1,32], index: 1, kind: input, shape index: {}]   ;;  %s329_s2 = inlined_call_operand.vmem [shape: f32[1,32], index: 2, kind: input, shape index: {}]   ;;  %s330_s3 = inlined_call_operand.vmem [shape: bf16[16,32], index: 3, kind: output, shape index: {}]  }
   0x1 LB: > { %s255_s13 = sadd.s32 4294967295, %s282_s12   ;;  %p259_p0 = scmp.ge.s32.totalorder %s282_s12, 1  ;;  %s282_s12 = sphi %s304_s12, %s13_s12  }
   0x2   : > { %p136_p1 = scmp.lt.s32.totalorder %s282_s12, 3 }
   0x4   : > { %p137_p2 = pnand %p259_p0, %p136_p1 }
   0x5   : > { %p158_p3 = scmp.lt.s32.totalorder (!%p137_p2), %s255_s13, 1  ;;  %vm170_vm0 = vcmask (!%p137_p2), 261120   ;;  %v262_v12 = vld [vmem:[%s328_s1] ss:$0 sm:$0xff] (!%p137_p2)  ;;  %vm200_vm1 = vcmask (!%p137_p2), 257024  }
   0x6   : > { %140 = sbr.rel (%p137_p2) target bundleno = 335 (0x14f), region = 32  ;;  %v263_v14 = vld [vmem:[%s329_s2] ss:$0 sm:$0xff] (!%p137_p2) }
   0xd   : > { %s332_s13 = smov (!%p158_p3, %s255_s13), 1 }
   0xe   : > { %s260_s14 = sshll.u32 %s332_s13, 2 }
   0xf   : > { %s161_s17 = scalar_lea.vmem %s327_s0, %s260_s14  ;;  %s165_s24 = scalar_lea.vmem %s330_s3, %s260_s14 }
  0x10   : > { %v166_v0 = vld [vmem:[%s161_s17] sm:$0xf] }
  0x11   : > { %v167_v1 = vunpack.c.l.bf16 %v166_v0 }
  0x13   : > { %v171_v2 = vsel %vm170_vm0, %v167_v1, 0.0 }
  0x14   : > { %172 = vadd.xlane.f32.xlu0 %v171_v2 }
  0xa1   : > { %v173_v3 = vpop.xlane.xlu0 %172 }
  0xa2   : > { %v175_v4 = vmul.f32 0.03125, %v173_v3 }
  0xa4   : > { %v176_v5 = vsub.f32 %v167_v1, %v175_v4 }
  0xa6   : > { %v177_v6 = vmul.f32 %v176_v5, %v176_v5 }
  0xa8   : > { %v178_v7 = vsel %vm170_vm0, %v177_v6, 0.0 }
  0xa9   : > { %179 = vadd.xlane.f32.xlu0 %v178_v7 }
 0x136   : > { %v180_v8 = vpop.xlane.xlu0 %179 }
 0x137   : > { %v181_v9 = vmul.f32 0.03125, %v180_v8 }
 0x139   : > { %v182_v10 = vadd.f32 1e-12, %v181_v9 }
 0x13b   : > { %274 = vrsqrt.f32 %v182_v10 }
 0x145   : > { %v275_v11 = vpop.eup %274 }
 0x146   : > { %v184_v13 = vmul.f32 %v275_v11, %v176_v5 }
 0x148   : > { %v191_v15 = vmul.f32 %v262_v12, %v184_v13 }
 0x14a   : > { %v198_v16 = vadd.f32 %v263_v14, %v191_v15 }
 0x14c   : > { %v199_v17 = vpack.c.bf16 %v198_v16, %v198_v16 }
 0x14e   : > { %201 = vst.msk [vmem:[%s165_s24] sm:$0xf] %vm200_vm1, %v199_v17 }
 0x14f PF: > { %s13_s12 = sadd.s32 1, %s282_s12  }
 0x150   : > { %p10_p4 = scmp.ge.s32.totalorder %s13_s12, 4  }
 0x152   :  { %12 = sbr.rel (!%p10_p4) target bundleno = 1 (0x1), region = 62 }

// kernel: bert_classifier_forward.7
= control target key start
LH: loop header
LB: loop body
LE: loop exit
PB: predicated region body
PF: predicated region fallthrough
CT: control target
= control target key end

     0   :  { %s1084_s27 = smov 0   ;;  %s1198_s0 = inlined_call_operand.vmem [shape: bf16[2,8,32], index: 0, kind: input, shape index: {}]   ;;  %s1199_s1 = inlined_call_operand.vmem [shape: f32[2,1,8], index: 1, kind: input, shape index: {}]   ;;  %s1200_s2 = inlined_call_operand.vmem [shape: bf16[2,32,48], index: 2, kind: input, shape index: {}]   ;;  %s1201_s3 = inlined_call_operand.vmem [shape: f32[2,1,48], index: 3, kind: input, shape index: {}]   ;;  %s1202_s4 = inlined_call_operand.vmem [shape: bf16[2,16,32], index: 4, kind: input, shape index: {}]   ;;  %s1203_s5 = inlined_call_operand.vmem [shape: f32[1,32], index: 5, kind: input, shape index: {}]   ;;  %s1204_s6 = inlined_call_operand.vmem [shape: f32[1,32], index: 6, kind: input, shape index: {}]   ;;  %s1205_s7 = inlined_call_operand.vmem [shape: f32[1,32], index: 7, kind: input, shape index: {}]   ;;  %s1206_s8 = inlined_call_operand.vmem [shape: bf16[2,8,32], index: 8, kind: output, shape index: {}]  }
   0x1 LB: > { %s893_s28 = sadd.s32 4294967295, %s1033_s27   ;;  %p897_p0 = scmp.ge.s32.totalorder %s1033_s27, 1  ;;  %s1033_s27 = sphi %s1084_s27, %s18_s27  }
   0x2   : > { %p269_p1 = scmp.lt.s32.totalorder %s1033_s27, 3 }
   0x4   : > { %p270_p2 = pnand %p897_p0, %p269_p1 }
   0x5   : > { %v1011_v0 = vld [vmem:[%s1200_s2] sm:$0xff] (!%p270_p2)   ;;  %v1035_v1 = vmov (!%p270_p2), 0.0   ;;  %v1012_v2 = vld [vmem:[%s1200_s2 + $0x8] sm:$0xff] (!%p270_p2)   ;;  %vm1036_vm0 = vmmov (!%p270_p2), 0   ;;  %p304_p3 = scmp.lt.s32.totalorder (!%p270_p2), %s893_s28, 1  ;;  %vm341_vm1 = vcmask (!%p270_p2), 261120  }
   0x6   : > { %273 = sbr.rel (%p270_p2) target bundleno = 2172 (0x87c), region = 52  ;;  %947 = vmatprep.subr.bf16.mxu0 (!%p270_p2), %v1035_v1  ;;  %955 = vmatprep.subr.bf16.mxu1 (!%p270_p2), %v1035_v1  ;;  %v900_v4 = vld [vmem:[%s1201_s3] ss:$0 sm:$0xff] (!%p270_p2)  ;;  %s1037_s17 = smov (!%p270_p2), 96   ;;  %vm462_vm2 = vcmask (!%p270_p2), 1043456   ;;  %vm397_vm3 = vcmask (!%p270_p2), 130048  }
   0x7   : > { %948 = vmatpush3.bf16.msra.mxu0 (!%p270_p2), %v1011_v0  ;;  %951 = vmatprep.mubr.msk.bf16.mxu0 (!%p270_p2), %vm1036_vm0, %v1035_v1  ;;  %s1038_s18 = smov (!%p270_p2), 112   ;;  %v1013_v16 = vld [vmem:[%s1200_s2 + $0x10] sm:$0xff] (!%p270_p2)   ;;  %v1014_v18 = vld [vmem:[%s1200_s2 + $0x18] sm:$0xff] (!%p270_p2)   ;;  %vm444_vm4 = vcmask (!%p270_p2), 64512   ;;  %v912_v35 = vld [vmem:[%s1201_s3 + $0x1] ss:$0 sm:$0xff] (!%p270_p2) }
   0x8   : > { %949 = vmatprep.subr.bf16.mxu0 (!%p270_p2), %v1035_v1  ;;  %957 = vmatprep.mubr.msk.bf16.mxu1 (!%p270_p2), %vm1036_vm0, %v1035_v1  ;;  %v1016_v61 = vld [vmem:[%s1202_s4 + $0x8] sm:$0xff] (!%p270_p2)   ;;  %vm829_vm5 = vcmask (!%p270_p2), 257024  }
   0xb   : > { %950 = vmatpush3.bf16.msra.mxu0 (!%p270_p2), %v1012_v2 }
   0xc   : > { %961 = vmatprep.subr.bf16.mxu0 (!%p270_p2), %v1035_v1 }
   0xd   : > { %s1208_s28 = smov (!%p304_p3, %s893_s28), 1 }
   0xe   : > { %s898_s11 = sshll.u32 %s1208_s28, 2  ;;  %s310_s25 = scalar_lea.vmem %s1199_s1, %s1208_s28 }
   0xf   : > { %s307_s14 = scalar_lea.vmem %s1198_s0, %s898_s11  ;;  %v904_v19 = vld [vmem:[%s310_s25] ss:$0 sm:$0xff]  ;;  %s314_s21 = scalar_lea.vmem %s1206_s8, %s898_s11 }
  0x10   : > { %v1114_v3 = vld [vmem:[%s307_s14] sm:$0xf] }
  0x11   : > { %952 = vmatmul.mubr.msk.bf16.vlgmr.msra.gmra.mrb[0].mxu0 %vm341_vm1, %v1114_v3 }
  0x12   : > { %963 = vmatprep.mubr.msk.bf16.mxu0 %vm1036_vm0, %v1035_v1 }
  0xe4   : > { %v379_v5 = vpop.f32.mrb[0].mxu0 }
  0xe5   : > { %v380_v6 = vadd.f32 %v900_v4, %v379_v5  ;;  %v953_v7 = vpop.f32.mrb[1].mxu0  ;;  %v1015_v5 = vld [vmem:[%s1202_s4] sm:$0xff]  }
  0xe6   : > { %v382_v8 = vpop.f32.mrb[2].mxu0 }
  0xe7   : > { %v954_v9 = vpop.f32.mrb[3].mxu0  ;;  %v387_v10 = vpack.c.bf16 %v380_v6, %v380_v6  ;;  %v385_v15 = vmul.f32 0.25, %v380_v6 }
  0xe9   : > { %457 = vrot.lane.b32.xlu1 %v387_v10, %s1037_s17  ;;  %395 = vrot.lane.b32.xlu0 %v387_v10, %s1038_s18  ;;  %v386_v17 = vpack.c.bf16 %v385_v15, %v385_v15 }
 0x15b   : > { %v458_v11 = vpop.permute.xlu1 %457  ;;  %v396_v12 = vpop.permute.xlu0 %395 }
 0x15c   : > { %v464_v13 = vsel %vm462_vm2, %v458_v11, 0  ;;  %v402_v14 = vsel %vm397_vm3, %v396_v12, 0 }
 0x15d   : > { %956 = vmatpush3.bf16.xpose.msra.mxu1 %v402_v14  ;;  %962 = vmatpush3.bf16.msra.mxu0 %v464_v13 }
 0x15e   : > { %967 = vmatprep.subr.bf16.mxu1 %v1035_v1  ;;  %975 = vmatprep.subr.bf16.mxu0 %v1035_v1 }
 0x164   : > { %958 = vmatmul.mubr.msk.bf16.vlgmr.msra.gmra.mrb[0].mxu1 %vm397_vm3, %v386_v17 }
 0x165   : > { %968 = vmatpush3.bf16.msra.mxu1 %v1013_v16  ;;  %971 = vmatprep.mubr.msk.bf16.mxu1 %vm1036_vm0, %v1035_v1 }
 0x166   : > { %969 = vmatprep.subr.bf16.mxu1 %v1035_v1 }
 0x169   : > { %970 = vmatpush3.bf16.msra.mxu1 %v1014_v18  ;;  %v924_v18 = vld [vmem:[%s1203_s5] ss:$0 sm:$0xff] }
 0x16a   : > { %981 = vmatprep.subr.bf16.mxu1 %v1035_v1 }
 0x16c   : > { %972 = vmatmul.mubr.msk.bf16.vlgmr.msra.gmra.mrb[4].mxu1 %vm341_vm1, %v1114_v3 }
 0x16d   : > { %983 = vmatprep.mubr.msk.bf16.mxu1 %vm1036_vm0, %v1035_v1 }
 0x237   : > { %v438_v20 = vpop.f32.mrb[0].mxu1 }
 0x238   : > { %v439_v21 = vadd.f32 %v904_v19, %v438_v20  ;;  %v959_v22 = vpop.f32.mrb[1].mxu1  ;;  %v796_v20 = vunpack.c.l.bf16 %v1114_v3 }
 0x239   : > { %v441_v23 = vpop.f32.mrb[2].mxu1 }
 0x23a   : > { %v960_v24 = vpop.f32.mrb[3].mxu1  ;;  %v445_v25 = vsel %vm444_vm4, %v439_v21, -inf }
 0x23b   : > { %446 = vmax.xlane.f32.xlu0 %v445_v25 }
 0x23f   : > { %v568_v26 = vpop.f32.mrb[4].mxu1 }
 0x240   : > { %v973_v27 = vpop.f32.mrb[5].mxu1  ;;  %v569_v36 = vadd.f32 %v912_v35, %v568_v26 }
 0x241   : > { %v571_v28 = vpop.f32.mrb[6].mxu1 }
 0x242   : > { %v974_v29 = vpop.f32.mrb[7].mxu1  ;;  %v576_v37 = vpack.c.bf16 %v569_v36, %v569_v36  ;;  %v574_v44 = vmul.f32 0.25, %v569_v36  ;;  %v926_v36 = vld [vmem:[%s1205_s7] ss:$0 sm:$0xff] }
 0x244   : > { %v575_v45 = vpack.c.bf16 %v574_v44, %v574_v44 }
 0x2c8   : > { %v447_v30 = vpop.xlane.xlu0 %446 }
 0x2c9   : > { %v448_v31 = vsub.f32 %v439_v21, %v447_v30 }
 0x2cb   : > { %v449_v32 = vmul.f32 1.442695, %v448_v31 }
 0x2cd   : > { %1017 = vpow2.f32 %v449_v32 }
 0x2d7   : > { %v1018_v33 = vpop.eup %1017 }
 0x2d8   : > { %v451_v34 = vsel %vm444_vm4, %v1018_v33, 0.0 }
 0x2d9   : > { %452 = vadd.xlane.f32.xlu1 %v451_v34  ;;  %v925_v34 = vld [vmem:[%s1204_s6] ss:$0 sm:$0xff] }
 0x2ea   : > { %578 = vrot.lane.b32.xlu1 %v576_v37, %s1038_s18 }
 0x366   : > { %v453_v38 = vpop.xlane.xlu1 %452 }
 0x367   : > { %1019 = vrcp.f32 %v453_v38 }
 0x36a   : > { %v579_v40 = vpop.permute.xlu1 %578 }
 0x36b   : > { %v584_v42 = vsel %vm397_vm3, %v579_v40, 0 }
 0x371   : > { %v1020_v39 = vpop.eup %1019 }
 0x372   : > { %v455_v41 = vmul.f32 %v1020_v39, %v1018_v33 }
 0x374   : > { %v456_v43 = vpack.c.bf16 %v455_v41, %v455_v41 }
 0x376   : > { %964 = vmatmul.mubr.msk.bf16.vlgmr.msra.gmra.mrb[4].mxu0 %vm444_vm4, %v456_v43 }
 0x377   : > { %976 = vmatpush3.bf16.xpose.msra.mxu0 %v584_v42  ;;  %977 = vmatprep.mubr.msk.bf16.mxu0 %vm1036_vm0, %v1035_v1 }
 0x378   : > { %987 = vmatprep.subr.bf16.mxu0 %v1035_v1 }
 0x37e   : > { %978 = vmatmul.mubr.msk.bf16.vlgmr.msra.gmra.mrb[8].mxu0 %vm397_vm3, %v575_v45 }
 0x37f   : > { %989 = vmatprep.mubr.msk.bf16.mxu0 %vm1036_vm0, %v1035_v1  ;;  %988 = vmatpush3.bf16.msra.mxu0 %v1016_v61 }
 0x449   : > { %v500_v46 = vpop.f32.mrb[4].mxu0 }
 0x44a   : > { %v965_v47 = vpop.f32.mrb[5].mxu0  ;;  %v506_v7 = vpack.c.bf16 %v500_v46, %v500_v46 }
 0x44b   : > { %v503_v48 = vpop.f32.mrb[6].mxu0 }
 0x44c   : > { %v966_v49 = vpop.f32.mrb[7].mxu0 }
 0x451   : > { %v620_v50 = vpop.f32.mrb[8].mxu0 }
 0x452   : > { %v621_v51 = vadd.f32 %v904_v19, %v620_v50  ;;  %v979_v52 = vpop.f32.mrb[9].mxu0 }
 0x453   : > { %v623_v53 = vpop.f32.mrb[10].mxu0 }
 0x454   : > { %v980_v54 = vpop.f32.mrb[11].mxu0  ;;  %v626_v55 = vsel %vm444_vm4, %v621_v51, -inf }
 0x455   : > { %627 = vmax.xlane.f32.xlu1 %v626_v55 }
 0x4e2   : > { %v628_v56 = vpop.xlane.xlu1 %627 }
 0x4e3   : > { %v629_v57 = vsub.f32 %v621_v51, %v628_v56 }
 0x4e5   : > { %v630_v58 = vmul.f32 1.442695, %v629_v57 }
 0x4e7   : > { %1021 = vpow2.f32 %v630_v58 }
 0x4f1   : > { %v1022_v59 = vpop.eup %1021 }
 0x4f2   : > { %v632_v60 = vsel %vm444_vm4, %v1022_v59, 0.0 }
 0x4f3   : > { %633 = vadd.xlane.f32.xlu0 %v632_v60 }
 0x509   : > { %638 = vrot.lane.b32.xlu0 %v576_v37, %s1037_s17 }
 0x580   : > { %v634_v62 = vpop.xlane.xlu0 %633 }
 0x581   : > { %1023 = vrcp.f32 %v634_v62 }
 0x584   : > { %v639_v63 = vpop.permute.xlu0 %638 }
 0x585   : > { %v644_v0 = vsel %vm462_vm2, %v639_v63, 0 }
 0x586   : > { %982 = vmatpush3.bf16.msra.mxu1 %v644_v0 }
 0x587   : > { %993 = vmatprep.subr.bf16.mxu1 %v1035_v1 }
 0x58b   : > { %v1024_v2 = vpop.eup %1023 }
 0x58c   : > { %v636_v4 = vmul.f32 %v1024_v2, %v1022_v59 }
 0x58e   : > { %v637_v6 = vpack.c.bf16 %v636_v4, %v636_v4 }
 0x590   : > { %984 = vmatmul.mubr.msk.bf16.vlgmr.msra.gmra.mrb[8].mxu1 %vm444_vm4, %v637_v6 }
 0x591   : > { %994 = vmatpush3.bf16.msra.mxu1 %v1015_v5  ;;  %995 = vmatprep.mubr.msk.bf16.mxu1 %vm1036_vm0, %v1035_v1 }
 0x598   : > { %996 = vmatmul.mubr.msk.bf16.vlgmr.msra.gmra.mrb[12].mxu1 %vm397_vm3, %v506_v7 }
 0x663   : > { %v680_v8 = vpop.f32.mrb[8].mxu1 }
 0x664   : > { %v686_v9 = vpack.c.bf16 %v680_v8, %v680_v8  ;;  %v985_v10 = vpop.f32.mrb[9].mxu1 }
 0x665   : > { %v683_v11 = vpop.f32.mrb[10].mxu1 }
 0x666   : > { %v986_v12 = vpop.f32.mrb[11].mxu1  ;;  %990 = vmatmul.mubr.msk.bf16.vlgmr.msra.gmra.mrb[12].mxu0 %vm397_vm3, %v686_v9 }
 0x66b   : > { %v782_v13 = vpop.f32.mrb[12].mxu1 }
 0x66c   : > { %v997_v14 = vpop.f32.mrb[13].mxu1 }
 0x66d   : > { %v785_v15 = vpop.f32.mrb[14].mxu1 }
 0x66e   : > { %v998_v16 = vpop.f32.mrb[15].mxu1 }
 0x739   : > { %v733_v17 = vpop.f32.mrb[12].mxu0 }
 0x73a   : > { %v783_v1 = vadd.f32 %v782_v13, %v733_v17  ;;  %v991_v19 = vpop.f32.mrb[13].mxu0 }
 0x73b   : > { %v736_v21 = vpop.f32.mrb[14].mxu0 }
 0x73c   : > { %v795_v22 = vadd.f32 %v924_v18, %v783_v1  ;;  %v992_v23 = vpop.f32.mrb[15].mxu0 }
 0x73e   : > { %v797_v24 = vadd.f32 %v796_v20, %v795_v22 }
 0x740   : > { %v800_v25 = vsel %vm341_vm1, %v797_v24, 0.0 }
 0x741   : > { %801 = vadd.xlane.f32.xlu0 %v800_v25 }
 0x7ce   : > { %v802_v26 = vpop.xlane.xlu0 %801 }
 0x7cf   : > { %v804_v27 = vmul.f32 0.03125, %v802_v26 }
 0x7d1   : > { %v805_v28 = vsub.f32 %v797_v24, %v804_v27 }
 0x7d3   : > { %v806_v29 = vmul.f32 %v805_v28, %v805_v28 }
 0x7d5   : > { %v807_v30 = vsel %vm341_vm1, %v806_v29, 0.0 }
 0x7d6   : > { %808 = vadd.xlane.f32.xlu1 %v807_v30 }
 0x863   : > { %v809_v31 = vpop.xlane.xlu1 %808 }
 0x864   : > { %v810_v32 = vmul.f32 0.03125, %v809_v31 }
 0x866   : > { %v811_v33 = vadd.f32 1e-12, %v810_v32 }
 0x868   : > { %1025 = vrsqrt.f32 %v811_v33 }
 0x872   : > { %v1026_v3 = vpop.eup %1025 }
 0x873   : > { %v813_v35 = vmul.f32 %v1026_v3, %v805_v28 }
 0x875   : > { %v820_v37 = vmul.f32 %v925_v34, %v813_v35 }
 0x877   : > { %v827_v38 = vadd.f32 %v926_v36, %v820_v37 }
 0x879   : > { %v828_v39 = vpack.c.bf16 %v827_v38, %v827_v38 }
 0x87b   : > { %830 = vst.msk [vmem:[%s314_s21] sm:$0xf] %vm829_vm5, %v828_v39 }
 0x87c PF: > { %s18_s27 = sadd.s32 1, %s1033_s27  }
 0x87d   : > { %p15_p4 = scmp.ge.s32.totalorder %s18_s27, 4  }
 0x87f   :  { %17 = sbr.rel (!%p15_p4) target bundleno = 1 (0x1), region = 88 }

// kernel: bert_classifier_forward.8
= control target key start
LH: loop header
LB: loop body
LE: loop exit
PB: predicated region body
PF: predicated region fallthrough
CT: control target
= control target key end

     0   :  { %s643_s24 = smov 0   ;;  %s700_s0 = inlined_call_operand.vmem [shape: bf16[16,32], index: 0, kind: input, shape index: {}]   ;;  %s701_s1 = inlined_call_operand.vmem [shape: bf16[32,64], index: 1, kind: input, shape index: {}]   ;;  %s702_s2 = inlined_call_operand.vmem [shape: f32[1,64], index: 2, kind: input, shape index: {}]   ;;  %s703_s3 = inlined_call_operand.vmem [shape: bf16[64,32], index: 3, kind: input, shape index: {}]   ;;  %s704_s4 = inlined_call_operand.vmem [shape: f32[1,32], index: 4, kind: input, shape index: {}]   ;;  %s705_s5 = inlined_call_operand.vmem [shape: f32[1,32], index: 5, kind: input, shape index: {}]   ;;  %s706_s6 = inlined_call_operand.vmem [shape: f32[1,32], index: 6, kind: input, shape index: {}]   ;;  %s707_s7 = inlined_call_operand.vmem [shape: bf16[16,32], index: 7, kind: output, shape index: {}]  }
   0x1 LB: > { %s524_s25 = sadd.s32 4294967295, %s599_s24   ;;  %p528_p0 = scmp.ge.s32.totalorder %s599_s24, 1  ;;  %s599_s24 = sphi %s643_s24, %s17_s24  }
   0x2   : > { %p236_p1 = scmp.lt.s32.totalorder %s599_s24, 3 }
   0x4   : > { %p237_p2 = pnand %p528_p0, %p236_p1 }
   0x5   : > { %v583_v0 = vld [vmem:[%s701_s1] sm:$0xff] (!%p237_p2)   ;;  %v601_v1 = vmov (!%p237_p2), 0.0   ;;  %v584_v2 = vld [vmem:[%s701_s1 + $0x8] sm:$0xff] (!%p237_p2)   ;;  %vm602_vm0 = vmmov (!%p237_p2), 0   ;;  %p266_p3 = scmp.lt.s32.totalorder (!%p237_p2), %s524_s25, 1  ;;  %vm299_vm1 = vcmask (!%p237_p2), 261120  }
   0x6   : > { %240 = sbr.rel (%p237_p2) target bundleno = 790 (0x316), region = 48  ;;  %553 = vmatprep.subr.bf16.mxu0 (!%p237_p2), %v601_v1  ;;  %561 = vmatprep.subr.bf16.mxu1 (!%p237_p2), %v601_v1  ;;  %v585_v4 = vld [vmem:[%s703_s3] sm:$0xff] (!%p237_p2)   ;;  %v586_v5 = vld [vmem:[%s703_s3 + $0x8] sm:$0xff] (!%p237_p2)   ;;  %v587_v6 = vld [vmem:[%s703_s3 + $0x10] sm:$0xff] (!%p237_p2)   ;;  %vm392_vm2 = vcmask (!%p237_p2), 523264   ;;  %vm469_vm3 = vcmask (!%p237_p2), 257024  }
   0x7   : > { %554 = vmatpush3.bf16.msra.mxu0 (!%p237_p2), %v583_v0  ;;  %557 = vmatprep.mubr.msk.bf16.mxu0 (!%p237_p2), %vm602_vm0, %v601_v1  ;;  %v588_v7 = vld [vmem:[%s703_s3 + $0x18] sm:$0xff] (!%p237_p2)   ;;  %v531_v8 = vld [vmem:[%s702_s2] ss:$0 sm:$0xff] (!%p237_p2) }
   0x8   : > { %555 = vmatprep.subr.bf16.mxu0 (!%p237_p2), %v601_v1  ;;  %569 = vmatprep.mubr.msk.bf16.mxu1 (!%p237_p2), %vm602_vm0, %v601_v1  ;;  %v535_v24 = vld [vmem:[%s704_s4] ss:$0 sm:$0xff] (!%p237_p2) }
   0x9   : > { %562 = vmatpush3.bf16.msra.mxu1 (!%p237_p2), %v585_v4  ;;  %v541_v42 = vld [vmem:[%s705_s5] ss:$0 sm:$0xff] (!%p237_p2) }
   0xa   : > { %563 = vmatprep.subr.bf16.mxu1 (!%p237_p2), %v601_v1  ;;  %v542_v44 = vld [vmem:[%s706_s6] ss:$0 sm:$0xff] (!%p237_p2) }
   0xb   : > { %556 = vmatpush3.bf16.msra.mxu0 (!%p237_p2), %v584_v2 }
   0xd   : > { %s709_s25 = smov (!%p266_p3, %s524_s25), 1  ;;  %564 = vmatpush3.bf16.msra.mxu1 %v586_v5 }
   0xe   : > { %s529_s30 = sshll.u32 %s709_s25, 2  ;;  %565 = vmatprep.subr.bf16.mxu1 %v601_v1 }
   0xf   : > { %s269_s10 = scalar_lea.vmem %s700_s0, %s529_s30  ;;  %s273_s9 = scalar_lea.vmem %s707_s7, %s529_s30 }
  0x10   : > { %v275_v3 = vld [vmem:[%s269_s10] sm:$0xf] }
  0x11   : > { %558 = vmatmul.mubr.msk.bf16.vlgmr.msra.gmra.mrb[0].mxu0 %vm299_vm1, %v275_v3  ;;  %566 = vmatpush3.bf16.msra.mxu1 %v587_v6  ;;  %v436_v25 = vunpack.c.l.bf16 %v275_v3 }
  0x12   : > { %567 = vmatprep.subr.bf16.mxu1 %v601_v1 }
  0x15   : > { %568 = vmatpush3.bf16.msra.mxu1 %v588_v7 }
  0xe4   : > { %v337_v9 = vpop.f32.mrb[0].mxu0 }
  0xe5   : > { %v338_v10 = vadd.f32 %v531_v8, %v337_v9  ;;  %v559_v11 = vpop.f32.mrb[1].mxu0 }
  0xe6   : > { %v340_v12 = vpop.f32.mrb[2].mxu0 }
  0xe7   : > { %v344_v13 = vmul.f32 0.044715, %v338_v10  ;;  %v560_v14 = vpop.f32.mrb[3].mxu0  ;;  %v343_v20 = vmul.f32 0.5, %v338_v10 }
  0xe9   : > { %v345_v15 = vmul.f32 %v344_v13, %v338_v10 }
  0xeb   : > { %v346_v16 = vmul.f32 %v345_v15, %v338_v10 }
  0xed   : > { %v347_v17 = vadd.f32 %v346_v16, %v338_v10 }
  0xef   : > { %v348_v18 = vmul.f32 0.7978846, %v347_v17 }
  0xf1   : > { %589 = vtanh.f32 %v348_v18 }
  0xfb   : > { %v590_v19 = vpop.eup %589 }
  0xfc   : > { %v350_v21 = vadd.f32 1.0, %v590_v19 }
  0xfe   : > { %v351_v22 = vmul.f32 %v350_v21, %v343_v20 }
 0x100   : > { %v352_v23 = vpack.c.bf16 %v351_v22, %v351_v22 }
 0x102   : > { %570 = vmatmul.mubr.msk.bf16.vlgmr.msra.gmra.mrb[0].mxu1 %vm392_vm2, %v352_v23 }
 0x1d5   : > { %v430_v26 = vpop.f32.mrb[0].mxu1 }
 0x1d6   : > { %v431_v27 = vadd.f32 %v535_v24, %v430_v26  ;;  %v571_v28 = vpop.f32.mrb[1].mxu1 }
 0x1d7   : > { %v433_v29 = vpop.f32.mrb[2].mxu1 }
 0x1d8   : > { %v572_v30 = vpop.f32.mrb[3].mxu1  ;;  %v437_v31 = vadd.f32 %v436_v25, %v431_v27 }
 0x1da   : > { %v440_v32 = vsel %vm299_vm1, %v437_v31, 0.0 }
 0x1db   : > { %441 = vadd.xlane.f32.xlu0 %v440_v32 }
 0x268   : > { %v442_v33 = vpop.xlane.xlu0 %441 }
 0x269   : > { %v444_v34 = vmul.f32 0.03125, %v442_v33 }
 0x26b   : > { %v445_v35 = vsub.f32 %v437_v31, %v444_v34 }
 0x26d   : > { %v446_v36 = vmul.f32 %v445_v35, %v445_v35 }
 0x26f   : > { %v447_v37 = vsel %vm299_vm1, %v446_v36, 0.0 }
 0x270   : > { %448 = vadd.xlane.f32.xlu0 %v447_v37 }
 0x2fd   : > { %v449_v38 = vpop.xlane.xlu0 %448 }
 0x2fe   : > { %v450_v39 = vmul.f32 0.03125, %v449_v38 }
 0x300   : > { %v451_v40 = vadd.f32 1e-12, %v450_v39 }
 0x302   : > { %591 = vrsqrt.f32 %v451_v40 }
 0x30c   : > { %v592_v41 = vpop.eup %591 }
 0x30d   : > { %v453_v43 = vmul.f32 %v592_v41, %v445_v35 }
 0x30f   : > { %v460_v45 = vmul.f32 %v541_v42, %v453_v43 }
 0x311   : > { %v467_v46 = vadd.f32 %v542_v44, %v460_v45 }
 0x313   : > { %v468_v47 = vpack.c.bf16 %v467_v46, %v467_v46 }
 0x315   : > { %470 = vst.msk [vmem:[%s273_s9] sm:$0xf] %vm469_vm3, %v468_v47 }
 0x316 PF: > { %s17_s24 = sadd.s32 1, %s599_s24  }
 0x317   : > { %p14_p4 = scmp.ge.s32.totalorder %s17_s24, 4  }
 0x319   :  { %16 = sbr.rel (!%p14_p4) target bundleno = 1 (0x1), region = 78 }

// kernel: bert_classifier_forward.11
= control target key start
LH: loop header
LB: loop body
LE: loop exit
PB: predicated region body
PF: predicated region fallthrough
CT: control target
= control target key end

     0   :  { %v236_v1 = vmov 0.0   ;;  %vm237_vm0 = vmmov 0   ;;  %s304_s0 = inlined_call_operand.vmem [shape: bf16[2,32], index: 0, kind: input, shape index: {}]   ;;  %s305_s1 = inlined_call_operand.vmem [shape: bf16[32,32], index: 1, kind: input, shape index: {}]   ;;  %s306_s2 = inlined_call_operand.vmem [shape: f32[1,32], index: 2, kind: input, shape index: {}]   ;;  %s307_s3 = inlined_call_operand.vmem [shape: bf16[32,128], index: 3, kind: input, shape index: {}]   ;;  %s308_s4 = inlined_call_operand.vmem [shape: f32[1,128], index: 4, kind: input, shape index: {}]   ;;  %s309_s5 = inlined_call_operand.hbm [shape: f32[2,128], index: 5, kind: output, shape index: {}]  }
   0x1   :  { %v206_v0 = vld [vmem:[%s305_s1] sm:$0xff]   ;;  %187 = vmatprep.subr.bf16.mxu0 %v236_v1  ;;  %195 = vmatprep.subr.bf16.mxu1 %v236_v1  ;;  %v207_v2 = vld [vmem:[%s305_s1 + $0x8] sm:$0xff]  }
   0x2   :  { %188 = vmatpush3.bf16.msra.mxu0 %v206_v0  ;;  %191 = vmatprep.mubr.msk.bf16.mxu0 %vm237_vm0, %v236_v1 }
   0x3   :  { %189 = vmatprep.subr.bf16.mxu0 %v236_v1  ;;  %199 = vmatprep.mubr.msk.bf16.mxu1 %vm237_vm0, %v236_v1 }
   0x4   :  { %10 = vsyncpa [#allocation3], 0  ;;  %v22_v3 = vld [vmem:[%s304_s0] sm:$0x1]  ;;  %vm46_vm1 = vcmask 261120   ;;  %v209_v5 = vld [vmem:[%s307_s3 + $0x8] sm:$0xff]  }
   0x5   :  { %v208_v4 = vld [vmem:[%s307_s3] sm:$0xff]   ;;  %s238_s3 = smov [#allocation2]  }
   0x6   :  { %190 = vmatpush3.bf16.msra.mxu0 %v207_v2  ;;  %196 = vmatpush3.bf16.msra.mxu1 %v208_v4  ;;  %v173_v6 = vld [vmem:[%s306_s2] ss:$0 sm:$0xff]  ;;  %s165_s30 = sshll.u32 %s238_s3, 4  ;;  %s166_s30 = int_to_ptr.vmem [resolvable:$true] %s165_s30 }
   0x7   :  { %197 = vmatprep.subr.bf16.mxu1 %v236_v1  ;;  %v177_v14 = vld [vmem:[%s308_s4] ss:$0 sm:$0xff]  ;;  %s212_s2 = scalar_lea.vmem %s166_s30, 32  ;;  %p217_p1 = scmp.lt.s32.totalorder %s166_s30, %s166_s30 }
   0x8   :  { %p213_p0 = scmp.ne.s32.totalorder %s166_s30, %s212_s2  ;;  %p218_p2 = scmp.lt.s32.totalorder %s212_s2, %s212_s2 }
   0x9   :  { %192 = vmatmul.mubr.msk.bf16.vlgmr.msra.gmra.mrb[0].mxu0 %vm46_vm1, %v22_v3 }
   0xa   :  { %198 = vmatpush3.bf16.msra.mxu1 %v209_v5  ;;  %p219_p3 = por %p218_p2, %p217_p1 }
   0xc   :  { %p220_p4 = pnand %p219_p3, %p213_p0 }
  0xdc   :  { %v84_v7 = vpop.f32.mrb[0].mxu0 }
  0xdd   :  { %v85_v8 = vadd.f32 %v173_v6, %v84_v7  ;;  %v193_v9 = vpop.f32.mrb[1].mxu0 }
  0xde   :  { %v87_v10 = vpop.f32.mrb[2].mxu0 }
  0xdf   :  { %210 = vtanh.f32 %v85_v8  ;;  %v194_v11 = vpop.f32.mrb[3].mxu0 }
  0xe9   :  { %v211_v12 = vpop.eup %210 }
  0xea   :  { %v91_v13 = vpack.c.bf16 %v211_v12, %v211_v12 }
  0xec   :  { %200 = vmatmul.mubr.msk.bf16.vlgmr.msra.gmra.mrb[0].mxu1 %vm46_vm1, %v91_v13 }
 0x1bf   :  { %v152_v15 = vpop.f32.mrb[0].mxu1 }
 0x1c0   :  { %v153_v16 = vadd.f32 %v177_v14, %v152_v15  ;;  %v201_v17 = vpop.f32.mrb[1].mxu1 }
 0x1c1   :  { %v155_v18 = vpop.f32.mrb[2].mxu1 }
 0x1c2   :  { %158 = vst [vmem:[#allocation2] sm:$0x3] %v153_v16  ;;  %v202_v19 = vpop.f32.mrb[3].mxu1 }
 0x1c3   :  { %223 = shalt.err (!%p220_p4)
}
 0x1c4   :  { %s224_s4 = scalar_lea.hbm %s309_s5, 32 }
 0x1c5   :  { %p225_p5 = scmp.ne.s32.totalorder %s309_s5, %s224_s4  ;;  %p228_p6 = scmp.lt.u32.totalorder %s224_s4, %s309_s5 }
 0x1c7   :  { %p230_p7 = pnand %p228_p6, %p225_p5 }
 0x1c9   :  { %233 = shalt.err (!%p230_p7)
}
 0x1ca   :  { %168 = dma.vmem_to_hbm [thread:$0]  %s166_s30, 32, %s309_s5, [#allocation3]  }
 0x1cb   :  { %234 = dma.done.wait [#allocation3], 32  }
 0x1cc   :  { %235 = vsyncadd [#allocation3], 4294967264 }
 0x1cd   :  { %172 = vsyncpa [#allocation3], 1 }

</bundles_post_ra>
